<compile_context>
chip_gen: v7x
topology: tpu7x:2x2x1
jax: 0.10.0
libtpu: 0.0.40
codegen_flags: <defaults>
</compile_context>

<pallas_src>
import jax
import jax.numpy as jnp
from jax.experimental import pallas as pl
from jax.experimental.pallas import tpu as pltpu

LANE = 128       # vreg lane width (last-dim tiling unit)
K_ALIGN = 512    # gene-dim padding unit so the layer-0 K-streaming tiles divide evenly


def _round_up(x, m):
    return ((x + m - 1) // m) * m


# ---------------------------------------------------------------------------
# One-time probe: can constant-index operands be single-buffered
# (pipeline_mode=pl.Buffered(1))?  Falls back to default double-buffering.
# ---------------------------------------------------------------------------
_CONST_BLOCK_KW = None


def _const_block_kwargs():
    global _CONST_BLOCK_KW
    if _CONST_BLOCK_KW is not None:
        return _CONST_BLOCK_KW
    kw = {}
    if hasattr(pl, "Buffered"):
        try:
            def _probe_kernel(x_ref, o_ref):
                o_ref[...] = x_ref[...]
            xp = jnp.zeros((8, 128), jnp.float32)
            out = pl.pallas_call(
                _probe_kernel,
                out_shape=jax.ShapeDtypeStruct((8, 128), jnp.float32),
                grid=(1,),
                in_specs=[pl.BlockSpec((8, 128), lambda i: (0, 0),
                                       pipeline_mode=pl.Buffered(1))],
                out_specs=pl.BlockSpec((8, 128), lambda i: (0, 0)),
            )(xp)
            jax.block_until_ready(out)
            kw = {"pipeline_mode": pl.Buffered(1)}
        except Exception:
            kw = {}
    _CONST_BLOCK_KW = kw
    return kw


# ---------------------------------------------------------------------------
# Fused kernel.  Grid = (batch tiles, layer-0 K blocks).
#   refs = alphas(SMEM), x, w0, shift0, [w_i, shift_i for i>=1], w_f, b_f,
#          out, acc(scratch)
# Layer-0 accumulates over K blocks into the f32 scratch; on the last K block
# the rest of the network (resident weights) + L2 normalize runs.
# ---------------------------------------------------------------------------
def _make_encoder_kernel(n_hidden, act_dtype=jnp.bfloat16):
    def kernel(alphas_ref, x_ref, w0_ref, shift0_ref, *rest):
        *layer_refs, out_ref, acc_ref = rest
        k = pl.program_id(1)

        @pl.when(k == 0)
        def _():
            acc_ref[...] = jnp.zeros_like(acc_ref)

        # cast the f32 x tile to bf16 in-kernel (hidden under the matmul)
        acc_ref[...] += jnp.dot(x_ref[...].astype(act_dtype), w0_ref[...],
                                preferred_element_type=jnp.float32)

        @pl.when(k == pl.num_programs(1) - 1)
        def _():
            # layer 0 epilogue: folded (bias + BN) shift, then PReLU
            y = acc_ref[...] + shift0_ref[...]
            y = jnp.where(y > 0, y, alphas_ref[0] * y)
            h = y.astype(act_dtype)
            # hidden layers 1..n_hidden-1 (weights resident in VMEM)
            for l in range(1, n_hidden):
                w_ref = layer_refs[2 * (l - 1)]
                shift_ref = layer_refs[2 * (l - 1) + 1]
                y = jnp.dot(h, w_ref[...],
                            preferred_element_type=jnp.float32) + shift_ref[...]
                y = jnp.where(y > 0, y, alphas_ref[l] * y)
                h = y.astype(act_dtype)
            # final Linear + F.normalize(p=2, dim=1)
            wf_ref, bf_ref = layer_refs[-2], layer_refs[-1]
            y = jnp.dot(h, wf_ref[...],
                        preferred_element_type=jnp.float32) + bf_ref[...]
            sumsq = jnp.sum(y * y, axis=-1, keepdims=True)
            inv = jax.lax.rsqrt(jnp.maximum(sumsq, 1e-24))   # EUP rsqrt, clamp = torch 1e-12
            out_ref[...] = (y * inv).astype(out_ref.dtype)
    return kernel


# ---------------------------------------------------------------------------
# Parameter construction / one-time preparation
# ---------------------------------------------------------------------------
def init_encoder_params(key, n_genes, latent_dim, hidden_dim):
    """Random parameters mirroring the PyTorch Encoder layers (eval mode)."""
    params = []
    dims = [n_genes] + list(hidden_dim)
    for i in range(len(hidden_dim)):
        key, k_w, k_b, k_g, k_be, k_m, k_v, k_a = jax.random.split(key, 8)
        fan_in, fan_out = dims[i], dims[i + 1]
        bound = 1.0 / jnp.sqrt(fan_in)
        w = jax.random.uniform(k_w, (fan_out, fan_in), jnp.float32, -bound, bound)
        b = jax.random.uniform(k_b, (fan_out,), jnp.float32, -bound, bound)
        gamma = jax.random.uniform(k_g, (fan_out,), jnp.float32, 0.5, 1.5)
        beta = jax.random.uniform(k_be, (fan_out,), jnp.float32, -0.1, 0.1)
        rmean = jax.random.normal(k_m, (fan_out,), jnp.float32) * 0.1
        rvar = jax.random.uniform(k_v, (fan_out,), jnp.float32, 0.5, 1.5)
        alpha = jax.random.uniform(k_a, (1,), jnp.float32, 0.1, 0.4)  # per-layer shared alpha
        params.append(dict(w=w, b=b, gamma=gamma, beta=beta,
                           rmean=rmean, rvar=rvar, alpha=alpha))
    key, k_w, k_b = jax.random.split(key, 3)
    bound = 1.0 / jnp.sqrt(hidden_dim[-1])
    w = jax.random.uniform(k_w, (latent_dim, hidden_dim[-1]), jnp.float32, -bound, bound)
    b = jax.random.uniform(k_b, (latent_dim,), jnp.float32, -bound, bound)
    return params, dict(w=w, b=b)


def prepare_encoder_params(raw_hidden, raw_final, n_genes, latent_dim,
                           bn_eps=1e-5, weight_dtype=jnp.bfloat16):
    """One-time prep (NOT per forward call):
       - transpose weights to (in, out),
       - fold eval-mode BatchNorm SCALE into the weight columns (in f32, before
         the bf16 cast) and Linear bias + BN shift into a single per-feature shift,
       - zero-pad every dim (genes to K_ALIGN, others to LANE),
       - cast weights to bf16 for streaming / residency,
       - pack all PReLU alphas into one small array."""
    layers = []
    alphas = []
    in_dim, in_pad = n_genes, _round_up(n_genes, K_ALIGN)
    for p in raw_hidden:
        out_dim = p["w"].shape[0]
        out_pad = _round_up(out_dim, LANE)
        sg = p["gamma"] / jnp.sqrt(p["rvar"] + bn_eps)                 # BN scale
        w_folded = p["w"].T * sg[None, :]                              # fold scale into columns (f32)
        w_t = jnp.pad(w_folded, ((0, in_pad - in_dim), (0, out_pad - out_dim)))
        shift = jnp.pad((p["b"] - p["rmean"]) * sg + p["beta"],        # bias + BN shift
                        (0, out_pad - out_dim))
        layers.append(dict(w_t=w_t.astype(weight_dtype),
                           shift=shift.reshape(1, -1).astype(jnp.float32)))
        alphas.append(jnp.reshape(p["alpha"], ()).astype(jnp.float32))
        in_dim, in_pad = out_dim, out_pad
    out_dim = raw_final["w"].shape[0]
    out_pad = _round_up(out_dim, LANE)
    w_t = jnp.pad(raw_final["w"].T, ((0, in_pad - in_dim), (0, out_pad - out_dim)))
    bias = jnp.pad(raw_final["b"], (0, out_pad - out_dim))
    final = dict(w_t=w_t.astype(weight_dtype),
                 bias=bias.reshape(1, -1).astype(jnp.float32))
    meta = dict(n_genes=n_genes, n_genes_pad=_round_up(n_genes, K_ALIGN),
                latent_dim=latent_dim, latent_pad=out_pad,
                alphas=jnp.stack(alphas))
    return layers, final, meta


# ---------------------------------------------------------------------------
# Forward pass (single fused pallas_call, optional layer-0 K-streaming)
# ---------------------------------------------------------------------------
def encoder_forward(x, layers, final, meta, *, tm_max=256, max_fused_bytes=None):
    # TODO(synk): training-mode Dropout / BatchNorm batch-stats are not implemented
    # (inference semantics: Dropout == identity, BatchNorm uses running stats).
    M, K = x.shape
    assert K == meta["n_genes"]
    assert len(layers) >= 1
    Kp = meta["n_genes_pad"]
    Lp = meta["latent_pad"]
    n_hidden = len(layers)
    N0p = layers[0]["w_t"].shape[1]

    const_kw = _const_block_kwargs()
    resident_factor = 1 if const_kw else 2   # single- vs double-buffered constant blocks

    # ---- generation-aware VMEM budget (v7x: 64 MiB physical, v5e/v6e: 128 MiB)
    try:
        vmem_cap = int(getattr(pltpu.get_tpu_info(), "vmem_capacity_bytes",
                               128 * 2 ** 20))
    except Exception:
        vmem_cap = 128 * 2 ** 20
    budget = max_fused_bytes if max_fused_bytes is not None else int(0.6 * vmem_cap)

    # ---- batch tile: multiple of 16 (bf16 sublanes), <= tm_max, >= 2 tiles when possible
    grid_m_target = max(2, pl.cdiv(M, tm_max))          # >=2 so v7x's 2 TCs both get work
    tm = max(16, min(tm_max, _round_up(pl.cdiv(M, grid_m_target), 16)))
    Mp = _round_up(M, tm)
    grid_m = Mp // tm

    # ---- VMEM estimate & layer-0 K-tile choice
    widest = max([l["w_t"].shape[1] for l in layers] + [Lp])
    other_resident = (sum(int(l["w_t"].size) * l["w_t"].dtype.itemsize for l in layers[1:])
                      + int(final["w_t"].size) * final["w_t"].dtype.itemsize
                      + sum(int(l["shift"].size) * 4 for l in layers)
                      + int(final["bias"].size) * 4)

    def vmem_need_for(tk):
        nk = Kp // tk
        if nk == 1:                                  # layer-0 weight fully resident
            w0_term = resident_factor * Kp * N0p * 2
        else:                                        # streamed, double-buffered
            w0_term = 2 * tk * N0p * 2
        return (resident_factor * other_resident
                + w0_term
                + 2 * tm * tk * 4                    # x tile (f32), double-buffered
                + 2 * tm * Lp * 4                    # out tile (f32), double-buffered
                + tm * N0p * 4                       # layer-0 f32 accumulator scratch
                + 4 * tm * widest * 4)               # in-flight f32 activations / temps

    tk_candidates = [Kp] + [t for t in (4096, 2048, 1024, 512)
                            if t < Kp and Kp % t == 0]
    tk = tk_candidates[-1]                            # best effort: smallest tile
    for cand in tk_candidates:
        if vmem_need_for(cand) <= budget:
            tk = cand
            break
    # TODO(synk): if even tk=512 exceeds the budget (gigantic hidden dims), layers 1+
    # would also need K/N tiling; not needed for scimilarity-scale models.
    nk = Kp // tk
    vmem_need = vmem_need_for(tk)
    vmem_limit = int(min(max(vmem_need + 8 * 2 ** 20, 32 * 2 ** 20),
                         0.9 * vmem_cap))

    # ---- inputs / specs (x stays f32: pad only, cast to bf16 inside the kernel)
    xp = jnp.pad(x, ((0, Mp - M), (0, Kp - K)))

    inputs = [meta["alphas"], xp, layers[0]["w_t"], layers[0]["shift"]]
    in_specs = [
        pl.BlockSpec(memory_space=pltpu.MemorySpace.SMEM),          # all PReLU alphas
        pl.BlockSpec((tm, tk), lambda i, k: (i, k)),                # x batch/K tile
    ]
    if nk == 1:   # layer-0 weight resident (constant index map)
        in_specs.append(pl.BlockSpec((tk, N0p), lambda i, k: (0, 0), **const_kw))
    else:         # layer-0 weight streamed along K
        in_specs.append(pl.BlockSpec((tk, N0p), lambda i, k: (k, 0)))
    in_specs.append(pl.BlockSpec((1, N0p), lambda i, k: (0, 0), **const_kw))

    for lyr in layers[1:]:
        kin, nout = lyr["w_t"].shape
        inputs += [lyr["w_t"], lyr["shift"]]
        in_specs += [pl.BlockSpec((kin, nout), lambda i, k: (0, 0), **const_kw),
                     pl.BlockSpec((1, nout), lambda i, k: (0, 0), **const_kw)]
    kin, nout = final["w_t"].shape
    inputs += [final["w_t"], final["bias"]]
    in_specs += [pl.BlockSpec((kin, nout), lambda i, k: (0, 0), **const_kw),
                 pl.BlockSpec((1, nout), lambda i, k: (0, 0), **const_kw)]

    out = pl.pallas_call(
        _make_encoder_kernel(n_hidden),
        out_shape=jax.ShapeDtypeStruct((Mp, Lp), jnp.float32),
        grid_spec=pltpu.PrefetchScalarGridSpec(
            num_scalar_prefetch=0,
            grid=(grid_m, nk),
            in_specs=in_specs,
            out_specs=pl.BlockSpec((tm, Lp), lambda i, k: (i, 0)),
            scratch_shapes=[pltpu.VMEM((tm, N0p), jnp.float32)],
        ),
        compiler_params=pltpu.CompilerParams(
            dimension_semantics=("parallel", "arbitrary"),
            vmem_limit_bytes=vmem_limit,
        ),
    )(*inputs)
    return out[:M, :meta["latent_dim"]]


# ---------------------------------------------------------------------------
# Pure-JAX f32 reference (mirrors the PyTorch module in eval mode)
# ---------------------------------------------------------------------------
def encoder_reference(x, raw_hidden, raw_final, bn_eps=1e-5):
    h = x
    for p in raw_hidden:
        y = h @ p["w"].T + p["b"]
        y = (y - p["rmean"]) / jnp.sqrt(p["rvar"] + bn_eps) * p["gamma"] + p["beta"]
        h = jnp.where(y > 0, y, p["alpha"][0] * y)
    y = h @ raw_final["w"].T + raw_final["b"]
    n = jnp.maximum(jnp.linalg.norm(y, axis=1, keepdims=True), 1e-12)
    return y / n


if __name__ == "__main__":
    batch = 200               # not a tile multiple -> exercises batch padding
    n_genes = 700             # pads to 1024 -> exercises gene padding + K streaming
    hidden_dim = [256, 192]   # 192 -> exercises hidden-dim padding
    latent_dim = 128

    key = jax.random.PRNGKey(0)
    key, k_x = jax.random.split(key)
    x = jax.random.normal(k_x, (batch, n_genes), jnp.float32)

    raw_hidden, raw_final = init_encoder_params(key, n_genes, latent_dim, hidden_dim)
    layers, final, meta = prepare_encoder_params(raw_hidden, raw_final,
                                                 n_genes, latent_dim)

    _const_block_kwargs()     # one-time Buffered(1) support probe (outside jit)
    ref = encoder_reference(x, raw_hidden, raw_final)

    # 1) default path: fully fused, all weights resident (nk == 1)
    fwd = jax.jit(lambda xx: encoder_forward(xx, layers, final, meta))
    out = jax.block_until_ready(fwd(x))
    assert out.shape == (batch, latent_dim)
    norms = jnp.linalg.norm(out, axis=1)
    assert bool(jnp.all(jnp.abs(norms - 1.0) < 1e-3)), "rows not unit-norm"
    max_err = float(jnp.max(jnp.abs(out - ref)))
    assert max_err < 5e-2, f"fused path mismatch vs f32 reference: {max_err}"

    # 2) forced layer-0 K-streaming path (production-scale fallback, nk > 1)
    fwd_s = jax.jit(lambda xx: encoder_forward(xx, layers, final, meta,
                                               max_fused_bytes=1))
    out_s = jax.block_until_ready(fwd_s(x))
    max_err_s = float(jnp.max(jnp.abs(out_s - ref)))
    assert max_err_s < 5e-2, f"streamed path mismatch vs f32 reference: {max_err_s}"

    print("KERNEL_OK")
</pallas_src>

<mosaic_0001>
module attributes {stable_mosaic.version = 11 : i64} {
  func.func @_probe_kernel(%arg0: i32, %arg1: memref<8x128xf32, #tpu.memory_space<vmem>>, %arg2: memref<8x128xf32, #tpu.memory_space<vmem>>) attributes {dimension_semantics = [#tpu.dimension_semantics<arbitrary>], iteration_bounds = array<i64: 1>, scalar_prefetch = 0 : i64, scratch_operands = 0 : i64, tpu.core_type = #tpu.core_type<tc>, window_params = [{pipeline_mode = #tpu.pipeline_mode<synchronous>, transform_indices = @transform_0, window_bounds = array<i64: 8, 128>}, {pipeline_mode = #tpu.pipeline_mode<synchronous>, transform_indices = @transform_1, window_bounds = array<i64: 8, 128>}]} {
    %c0 = arith.constant 0 : index
    %c0_0 = arith.constant 0 : index
    %0 = vector.load %arg1[%c0, %c0_0] : memref<8x128xf32, #tpu.memory_space<vmem>>, vector<8x128xf32>
    %c0_1 = arith.constant 0 : index
    %c0_2 = arith.constant 0 : index
    %1 = vector.load %arg2[%c0_1, %c0_2] : memref<8x128xf32, #tpu.memory_space<vmem>>, vector<8x128xf32>
    tpu.vector_store %arg2[%c0_1, %c0_2], %0 {strides = array<i32>} : memref<8x128xf32, #tpu.memory_space<vmem>>, vector<8x128xf32>,
    return
  }
  func.func @transform_0(%arg0: i32) -> (i32, i32) {
    %c0_i32 = arith.constant 0 : i32
    %c0_i32_0 = arith.constant 0 : i32
    %c0_i32_1 = arith.constant 0 : i32
    return %c0_i32, %c0_i32_0 : i32, i32
  }
  func.func @transform_1(%arg0: i32) -> (i32, i32) {
    %c0_i32 = arith.constant 0 : i32
    %c0_i32_0 = arith.constant 0 : i32
    %c0_i32_1 = arith.constant 0 : i32
    return %c0_i32, %c0_i32_0 : i32, i32
  }
}

module attributes {stable_mosaic.version = 11 : i64} {
  func.func @kernel(%arg0: i32, %arg1: i32, %arg2: memref<2xf32, #tpu.memory_space<smem>>, %arg3: memref<112x1024xf32, #tpu.memory_space<vmem>>, %arg4: memref<1024x256xbf16, #tpu.memory_space<vmem>>, %arg5: memref<1x256xf32, #tpu.memory_space<vmem>>, %arg6: memref<256x256xbf16, #tpu.memory_space<vmem>>, %arg7: memref<1x256xf32, #tpu.memory_space<vmem>>, %arg8: memref<256x128xbf16, #tpu.memory_space<vmem>>, %arg9: memref<1x128xf32, #tpu.memory_space<vmem>>, %arg10: memref<112x128xf32, #tpu.memory_space<vmem>>, %arg11: memref<112x256xf32, #tpu.memory_space<vmem>>) attributes {dimension_semantics = [#tpu.dimension_semantics<parallel>, #tpu.dimension_semantics<arbitrary>], iteration_bounds = array<i64: 2, 1>, scalar_prefetch = 0 : i64, scratch_operands = 1 : i64, tpu.core_type = #tpu.core_type<tc>, window_params = [{transform_indices = @transform_0, window_bounds = array<i64: 2>}, {transform_indices = @transform_1, window_bounds = array<i64: 112, 1024>}, {pipeline_mode = #tpu.pipeline_mode<synchronous>, transform_indices = @transform_2, window_bounds = array<i64: 1024, 256>}, {pipeline_mode = #tpu.pipeline_mode<synchronous>, transform_indices = @transform_3, window_bounds = array<i64: 1, 256>}, {pipeline_mode = #tpu.pipeline_mode<synchronous>, transform_indices = @transform_4, window_bounds = array<i64: 256, 256>}, {pipeline_mode = #tpu.pipeline_mode<synchronous>, transform_indices = @transform_5, window_bounds = array<i64: 1, 256>}, {pipeline_mode = #tpu.pipeline_mode<synchronous>, transform_indices = @transform_6, window_bounds = array<i64: 256, 128>}, {pipeline_mode = #tpu.pipeline_mode<synchronous>, transform_indices = @transform_7, window_bounds = array<i64: 1, 128>}, {transform_indices = @transform_8, window_bounds = array<i64: 112, 128>}]} {
    %c0_i32 = arith.constant 0 : i32
    %0 = arith.cmpi eq, %arg1, %c0_i32 : i32
    %1 = arith.extui %0 : i1 to i32
    %c0_i32_0 = arith.constant 0 : i32
    %2 = arith.cmpi ne, %1, %c0_i32_0 : i32
    scf.if %2 {
      %cst_10 = arith.constant 0.000000e+00 : f32
      %13 = vector.broadcast %cst_10 : f32 to vector<112x256xf32>
      %c0_11 = arith.constant 0 : index
      %c0_12 = arith.constant 0 : index
      %14 = vector.load %arg11[%c0_11, %c0_12] : memref<112x256xf32, #tpu.memory_space<vmem>>, vector<112x256xf32>
      tpu.vector_store %arg11[%c0_11, %c0_12], %13 {strides = array<i32>} : memref<112x256xf32, #tpu.memory_space<vmem>>, vector<112x256xf32>,
    } else {
    }
    %c0 = arith.constant 0 : index
    %c0_1 = arith.constant 0 : index
    %3 = vector.load %arg11[%c0, %c0_1] : memref<112x256xf32, #tpu.memory_space<vmem>>, vector<112x256xf32>
    %c0_2 = arith.constant 0 : index
    %c0_3 = arith.constant 0 : index
    %4 = vector.load %arg3[%c0_2, %c0_3] : memref<112x1024xf32, #tpu.memory_space<vmem>>, vector<112x1024xf32>
    %5 = arith.truncf %4 : vector<112x1024xf32> to vector<112x1024xbf16>
    %c0_4 = arith.constant 0 : index
    %c0_5 = arith.constant 0 : index
    %6 = vector.load %arg4[%c0_4, %c0_5] : memref<1024x256xbf16, #tpu.memory_space<vmem>>, vector<1024x256xbf16>
    %cst = arith.constant dense<0.000000e+00> : vector<112x256xf32>
    %7 = tpu.matmul %5, %6, %cst {dimension_numbers = #tpu.dot_dimension_numbers<[1], [0], [0], [1], [0, 0, 1, 1], [], []>} : vector<112x1024xbf16>, vector<1024x256xbf16>, vector<112x256xf32> -> vector<112x256xf32>
    %8 = arith.addf %3, %7 : vector<112x256xf32>
    %c0_6 = arith.constant 0 : index
    %c0_7 = arith.constant 0 : index
    %9 = vector.load %arg11[%c0_6, %c0_7] : memref<112x256xf32, #tpu.memory_space<vmem>>, vector<112x256xf32>
    tpu.vector_store %arg11[%c0_6, %c0_7], %8 {strides = array<i32>} : memref<112x256xf32, #tpu.memory_space<vmem>>, vector<112x256xf32>,
    %c0_i32_8 = arith.constant 0 : i32
    %10 = arith.cmpi eq, %arg1, %c0_i32_8 : i32
    %11 = arith.extui %10 : i1 to i32
    %c0_i32_9 = arith.constant 0 : i32
    %12 = arith.cmpi ne, %11, %c0_i32_9 : i32
    scf.if %12 {
      %c0_10 = arith.constant 0 : index
      %c0_11 = arith.constant 0 : index
      %13 = vector.load %arg11[%c0_10, %c0_11] : memref<112x256xf32, #tpu.memory_space<vmem>>, vector<112x256xf32>
      %c0_12 = arith.constant 0 : index
      %c0_13 = arith.constant 0 : index
      %14 = vector.load %arg5[%c0_12, %c0_13] : memref<1x256xf32, #tpu.memory_space<vmem>>, vector<1x256xf32>
      %15 = vector.broadcast %14 : vector<1x256xf32> to vector<112x256xf32>
      %16 = arith.addf %13, %15 : vector<112x256xf32>
      %cst_14 = arith.constant 0.000000e+00 : f32
      %17 = vector.broadcast %cst_14 : f32 to vector<112x256xf32>
      %18 = arith.cmpf ogt, %16, %17 : vector<112x256xf32>
      %c0_15 = arith.constant 0 : index
      %19 = memref.load %arg2[%c0_15] : memref<2xf32, #tpu.memory_space<smem>>
      %20 = vector.broadcast %19 : f32 to vector<112x256xf32>
      %21 = arith.mulf %20, %16 : vector<112x256xf32>
      %22 = arith.select %18, %16, %21 : vector<112x256xi1>, vector<112x256xf32>
      %23 = arith.truncf %22 : vector<112x256xf32> to vector<112x256xbf16>
      %c0_16 = arith.constant 0 : index
      %c0_17 = arith.constant 0 : index
      %24 = vector.load %arg6[%c0_16, %c0_17] : memref<256x256xbf16, #tpu.memory_space<vmem>>, vector<256x256xbf16>
      %cst_18 = arith.constant dense<0.000000e+00> : vector<112x256xf32>
      %25 = tpu.matmul %23, %24, %cst_18 {dimension_numbers = #tpu.dot_dimension_numbers<[1], [0], [0], [1], [0, 0, 1, 1], [], []>} : vector<112x256xbf16>, vector<256x256xbf16>, vector<112x256xf32> -> vector<112x256xf32>
      %c0_19 = arith.constant 0 : index
      %c0_20 = arith.constant 0 : index
      %26 = vector.load %arg7[%c0_19, %c0_20] : memref<1x256xf32, #tpu.memory_space<vmem>>, vector<1x256xf32>
      %27 = vector.broadcast %26 : vector<1x256xf32> to vector<112x256xf32>
      %28 = arith.addf %25, %27 : vector<112x256xf32>
      %cst_21 = arith.constant 0.000000e+00 : f32
      %29 = vector.broadcast %cst_21 : f32 to vector<112x256xf32>
      %30 = arith.cmpf ogt, %28, %29 : vector<112x256xf32>
      %c1 = arith.constant 1 : index
      %31 = memref.load %arg2[%c1] : memref<2xf32, #tpu.memory_space<smem>>
      %32 = vector.broadcast %31 : f32 to vector<112x256xf32>
      %33 = arith.mulf %32, %28 : vector<112x256xf32>
      %34 = arith.select %30, %28, %33 : vector<112x256xi1>, vector<112x256xf32>
      %35 = arith.truncf %34 : vector<112x256xf32> to vector<112x256xbf16>
      %c0_22 = arith.constant 0 : index
      %c0_23 = arith.constant 0 : index
      %36 = vector.load %arg8[%c0_22, %c0_23] : memref<256x128xbf16, #tpu.memory_space<vmem>>, vector<256x128xbf16>
      %cst_24 = arith.constant dense<0.000000e+00> : vector<112x128xf32>
      %37 = tpu.matmul %35, %36, %cst_24 {dimension_numbers = #tpu.dot_dimension_numbers<[1], [0], [0], [1], [0, 0, 1, 1], [], []>} : vector<112x256xbf16>, vector<256x128xbf16>, vector<112x128xf32> -> vector<112x128xf32>
      %c0_25 = arith.constant 0 : index
      %c0_26 = arith.constant 0 : index
      %38 = vector.load %arg9[%c0_25, %c0_26] : memref<1x128xf32, #tpu.memory_space<vmem>>, vector<1x128xf32>
      %39 = vector.broadcast %38 : vector<1x128xf32> to vector<112x128xf32>
      %40 = arith.addf %37, %39 : vector<112x128xf32>
      %41 = arith.mulf %40, %40 : vector<112x128xf32>
      %cst_27 = arith.constant dense<0.000000e+00> : vector<112xf32>
      %42 = vector.multi_reduction <add>, %41, %cst_27 [1] : vector<112x128xf32> to vector<112xf32>
      %43 = vector.shape_cast %42 : vector<112xf32> to vector<112x1xf32>
      %cst_28 = arith.constant 1.000000e-24 : f32
      %44 = vector.broadcast %cst_28 : f32 to vector<112x1xf32>
      %45 = arith.maximumf %43, %44 : vector<112x1xf32>
      %46 = math.rsqrt %45 : vector<112x1xf32>
      %47 = vector.broadcast %46 : vector<112x1xf32> to vector<112x128xf32>
      %48 = arith.mulf %40, %47 : vector<112x128xf32>
      %c0_29 = arith.constant 0 : index
      %c0_30 = arith.constant 0 : index
      %49 = vector.load %arg10[%c0_29, %c0_30] : memref<112x128xf32, #tpu.memory_space<vmem>>, vector<112x128xf32>
      tpu.vector_store %arg10[%c0_29, %c0_30], %48 {strides = array<i32>} : memref<112x128xf32, #tpu.memory_space<vmem>>, vector<112x128xf32>,
    } else {
    }
    return
  }
  func.func @transform_0(%arg0: i32, %arg1: i32) -> i32 {
    %c0_i32 = arith.constant 0 : i32
    %c0_i32_0 = arith.constant 0 : i32
    return %c0_i32 : i32
  }
  func.func @transform_1(%arg0: i32, %arg1: i32) -> (i32, i32) {
    %c0_i32 = arith.constant 0 : i32
    return %arg0, %arg1 : i32, i32
  }
  func.func @transform_2(%arg0: i32, %arg1: i32) -> (i32, i32) {
    %c0_i32 = arith.constant 0 : i32
    %c0_i32_0 = arith.constant 0 : i32
    %c0_i32_1 = arith.constant 0 : i32
    return %c0_i32, %c0_i32_0 : i32, i32
  }
  func.func @transform_3(%arg0: i32, %arg1: i32) -> (i32, i32) {
    %c0_i32 = arith.constant 0 : i32
    %c0_i32_0 = arith.constant 0 : i32
    %c0_i32_1 = arith.constant 0 : i32
    return %c0_i32, %c0_i32_0 : i32, i32
  }
  func.func @transform_4(%arg0: i32, %arg1: i32) -> (i32, i32) {
    %c0_i32 = arith.constant 0 : i32
    %c0_i32_0 = arith.constant 0 : i32
    %c0_i32_1 = arith.constant 0 : i32
    return %c0_i32, %c0_i32_0 : i32, i32
  }
  func.func @transform_5(%arg0: i32, %arg1: i32) -> (i32, i32) {
    %c0_i32 = arith.constant 0 : i32
    %c0_i32_0 = arith.constant 0 : i32
    %c0_i32_1 = arith.constant 0 : i32
    return %c0_i32, %c0_i32_0 : i32, i32
  }
  func.func @transform_6(%arg0: i32, %arg1: i32) -> (i32, i32) {
    %c0_i32 = arith.constant 0 : i32
    %c0_i32_0 = arith.constant 0 : i32
    %c0_i32_1 = arith.constant 0 : i32
    return %c0_i32, %c0_i32_0 : i32, i32
  }
  func.func @transform_7(%arg0: i32, %arg1: i32) -> (i32, i32) {
    %c0_i32 = arith.constant 0 : i32
    %c0_i32_0 = arith.constant 0 : i32
    %c0_i32_1 = arith.constant 0 : i32
    return %c0_i32, %c0_i32_0 : i32, i32
  }
  func.func @transform_8(%arg0: i32, %arg1: i32) -> (i32, i32) {
    %c0_i32 = arith.constant 0 : i32
    %c0_i32_0 = arith.constant 0 : i32
    return %arg0, %c0_i32 : i32, i32
  }
}

</mosaic_0001>

<bundles_post_ra>
// kernel: tpu_custom_call.1
= control target key start
LH: loop header
LB: loop body
LE: loop exit
PB: predicated region body
PF: predicated region fallthrough
CT: control target
= control target key end

     0   :  { %6 = vsyncpa [#allocation3], 0  ;;  %s124_s0 = inlined_call_operand.hbm [shape: f32[8,128], index: 0, kind: input, shape index: {}]   ;;  %s125_s1 = inlined_call_operand.hbm [shape: f32[8,128], index: 1, kind: output, shape index: {}]  }
   0x1   :  { %7 = vsyncpa [#allocation4], 0  ;;  %s88_s6 = smov [#allocation2]   ;;  %s40_s10 = scalar_lea.hbm %s124_s0, 128 }
   0x2   :  { %s14_s7 = sshll.u32 %s88_s6, 4  ;;  %p41_p0 = scmp.ne.s32.totalorder %s124_s0, %s40_s10  ;;  %s15_s7 = int_to_ptr.vmem [resolvable:$true] %s14_s7 }
   0x3   :  { %p44_p1 = scmp.lt.u32.totalorder %s40_s10, %s124_s0 }
   0x5   :  { %p46_p2 = pnand %p44_p1, %p41_p0 }
   0x7   :  { %49 = shalt.err (!%p46_p2)
}
   0x8   :  { %s50_s15 = scalar_lea.vmem %s15_s7, 128  ;;  %p55_p4 = scmp.lt.s32.totalorder %s15_s7, %s15_s7 }
   0x9   :  { %p51_p3 = scmp.ne.s32.totalorder %s15_s7, %s50_s15  ;;  %p56_p5 = scmp.lt.s32.totalorder %s50_s15, %s50_s15 }
   0xb   :  { %p57_p6 = por %p56_p5, %p55_p4 }
   0xd   :  { %p58_p7 = pnand %p57_p6, %p51_p3 }
   0xf   :  { %61 = shalt.err (!%p58_p7)
}
  0x10   :  { %17 = dma.hbm_to_vmem [thread:$0]  %s124_s0, 128, %s15_s7, [#allocation3]  }
  0x11   :  { %84 = dma.done.wait [#allocation3], 128  }
  0x12   :  { %85 = vsyncadd [#allocation3], 4294967168  ;;  %s89_s18 = smov [#allocation5]   ;;  %v21_v0 = vld [vmem:[#allocation2] sm:$0xff] }
  0x13   :  { %s29_s19 = sshll.u32 %s89_s18, 4  ;;  %22 = vst [vmem:[#allocation5] sm:$0xff] %v21_v0  ;;  %s30_s19 = int_to_ptr.vmem [resolvable:$true] %s29_s19 }
  0x14   :  { %s62_s20 = scalar_lea.vmem %s30_s19, 128  ;;  %p67_p9 = scmp.lt.s32.totalorder %s30_s19, %s30_s19 }
  0x15   :  { %p63_p8 = scmp.ne.s32.totalorder %s30_s19, %s62_s20  ;;  %p68_p10 = scmp.lt.s32.totalorder %s62_s20, %s62_s20 }
  0x17   :  { %p69_p11 = por %p68_p10, %p67_p9 }
  0x19   :  { %p70_p12 = pnand %p69_p11, %p63_p8 }
  0x1b   :  { %73 = shalt.err (!%p70_p12)
}
  0x1c   :  { %s74_s23 = scalar_lea.hbm %s125_s1, 128 }
  0x1d   :  { %p75_p13 = scmp.ne.s32.totalorder %s125_s1, %s74_s23  ;;  %p78_p0 = scmp.lt.u32.totalorder %s74_s23, %s125_s1 }
  0x1f   :  { %p80_p1 = pnand %p78_p0, %p75_p13 }
  0x21   :  { %83 = shalt.err (!%p80_p1)
}
  0x22   :  { %32 = dma.vmem_to_hbm [thread:$0]  %s30_s19, 128, %s125_s1, [#allocation4]  }
  0x23   :  { %86 = dma.done.wait [#allocation4], 128  }
  0x24   :  { %87 = vsyncadd [#allocation4], 4294967168 }
  0x25   :  { %36 = vsyncpa [#allocation3], 1 }
  0x26   :  { %37 = vsyncpa [#allocation4], 1 }

// kernel: _lambda_.1
= control target key start
LH: loop header
LB: loop body
LE: loop exit
PB: predicated region body
PF: predicated region fallthrough
CT: control target
= control target key end

     0   :  { %13 = vsyncpa [#allocation4], 0  ;;  %s3543_s27 = smov 0   ;;  %s3545_s28 = smov 0   ;;  %s4566_s0 = inlined_call_operand.vmem [shape: f32[2], index: 0, kind: input, shape index: {}]   ;;  %s4567_s1 = inlined_call_operand.vmem [shape: f32[224,1024], index: 1, kind: input, shape index: {}]   ;;  %s4568_s2 = inlined_call_operand.vmem [shape: bf16[1024,256], index: 2, kind: input, shape index: {}]   ;;  %s4569_s3 = inlined_call_operand.vmem [shape: f32[1,256], index: 3, kind: input, shape index: {}]   ;;  %s4570_s4 = inlined_call_operand.vmem [shape: bf16[256,256], index: 4, kind: input, shape index: {}]   ;;  %s4571_s5 = inlined_call_operand.vmem [shape: f32[1,256], index: 5, kind: input, shape index: {}]   ;;  %s4572_s6 = inlined_call_operand.vmem [shape: bf16[256,128], index: 6, kind: input, shape index: {}]   ;;  %s4573_s7 = inlined_call_operand.vmem [shape: f32[1,128], index: 7, kind: input, shape index: {}]   ;;  %s4574_s8 = inlined_call_operand.vmem [shape: f32[224,128], index: 8, kind: output, shape index: {}]  }
   0x1   :  { %s3547_s29 = smov 0  }
   0x2 LB: > { %s2802_s30 = sadd.s32 4294967295, %s3495_s29   ;;  %s31_s9 = sadd.s32 1, %s3491_s28  ;;  %s3495_s29 = sphi %s3547_s29, %s19_s29   ;;  %s3491_s28 = sphi %s3545_s28, %s4578_s28   ;;  %s3487_s27 = sphi %s3543_s27, %s4577_s27  }
   0x3   : > { %p33_p0 = scmp.ge.s32.totalorder %s31_s9, 2  ;;  %p2804_p1 = scmp.ge.s32.totalorder %s3495_s29, 1 }
   0x4   : > { %p237_p2 = scmp.lt.s32.totalorder %s3495_s29, 3  ;;  %p3568_p4 = scmp.eq.s32.totalorder %s2802_s30, 0 }
   0x5   : > { %s4580_s9 = smov (%p33_p0, %s31_s9), 0  ;;  %s250_s14 = sshll.u32 %s4566_s0, 4  ;;  %s251_s14 = int_to_ptr.vmem [resolvable:$true] %s250_s14 }
   0x6   : > { %p3564_p3 = pnand %p2804_p1, %p237_p2  ;;  %s3454_s15 = scalar_lea.vmem %s251_s14, 16 }
   0x7   : > { %p3455_p7 = scmp.ne.s32.totalorder %s251_s14, %s3454_s15  ;;  %p3462_p11 = scmp.lt.s32.totalorder %s251_s14, %s251_s14 }
   0x8   : > { %p3139_p5 = pneg %p3564_p3  ;;  %p3463_p12 = scmp.lt.s32.totalorder %s3454_s15, %s3454_s15 }
   0xa   : > { %p3140_p6 = pnand %p3568_p4, %p3139_p5  ;;  %p3464_p13 = por %p3463_p12, %p3462_p11 }
   0xc   : > { %p3456_p8 = pneg %p3140_p6 }
   0xe   : > { %p3457_p9 = pnand %p3456_p8, %p3455_p7 }
  0x10   : > { %p3458_p10 = pneg %p3457_p9 }
  0x12   : > { %p3465_p0 = pnand %p3464_p13, %p3458_p10 }
  0x14   : > { %3468 = shalt.err (!%p3465_p0)
}
  0x15   : > { %s3497_s16 = smov [#allocation3]   ;;  %296 = sbr.rel (%p3564_p3) target bundleno = 1099 (0x44b), region = 52 }
  0x16   : > { %3142 = dma.vmem_to_smem (!%p3140_p6), %s251_s14, 16, %s3497_s16, [#allocation4]  }
  0x1c   : > { %3482 = dma.done.wait (%p3568_p4), [#allocation4], 16  }
  0x1d   : > { %3484 = vsyncadd (%p3568_p4), [#allocation4], 4294967280 }
  0x1e   : > { %302 = sfence }
  0x1f   : > { %v3170_v0 = vld [vmem:[%s4568_s2 + $0x104] ss:$8 sps:$4 sm:$0xff]   ;;  %v3172_v1 = vld [vmem:[%s4568_s2 + $0x100] ss:$8 sps:$4 sm:$0xff]   ;;  %v3173_v2 = vld [vmem:[%s4568_s2 + $0x114] ss:$8 sps:$4 sm:$0xff]  }
  0x20   : > { %1454 = vmatprep.subr.bf16.mxu0 %v3170_v0  ;;  %v3175_v3 = vld [vmem:[%s4568_s2 + $0x110] ss:$8 sps:$4 sm:$0xff]   ;;  %s336_s25 = smul.u32 14, %s3487_s27  ;;  %v3176_v4 = vld [vmem:[%s4568_s2 + $0x124] ss:$8 sps:$4 sm:$0xff]   ;;  %s1918_s17 = sld [smem:[#allocation3]] }
  0x21   : > { %1455 = vmatpush1.bf16.msra.mxu0 %v3172_v1  ;;  %v3178_v5 = vld [vmem:[%s4568_s2 + $0x120] ss:$8 sps:$4 sm:$0xff]   ;;  %v3179_v6 = vld [vmem:[%s4568_s2 + $0x134] ss:$8 sps:$4 sm:$0xff]   ;;  %v3181_v7 = vld [vmem:[%s4568_s2 + $0x130] ss:$8 sps:$4 sm:$0xff]  }
  0x22   : > { %1456 = vmatprep.subr.bf16.mxu0 %v3173_v2  ;;  %p338_p1 = scmp.lt.s32.totalorder %s336_s25, 27  ;;  %v3182_v8 = vld [vmem:[%s4568_s2 + $0x144] ss:$8 sps:$4 sm:$0xff]   ;;  %v3184_v9 = vld [vmem:[%s4568_s2 + $0x140] ss:$8 sps:$4 sm:$0xff]   ;;  %s2972_s15 = sld [smem:[#allocation3 + $0x1]] }
  0x23   : > { %v3185_v10 = vld [vmem:[%s4568_s2 + $0x154] ss:$8 sps:$4 sm:$0xff]   ;;  %v3187_v11 = vld [vmem:[%s4568_s2 + $0x150] ss:$8 sps:$4 sm:$0xff]   ;;  %v3188_v12 = vld [vmem:[%s4568_s2 + $0x164] ss:$8 sps:$4 sm:$0xff]  }
  0x24   : > { %s4582_s25 = smov (!%p338_p1, %s336_s25), 27  ;;  %v3190_v16 = vld [vmem:[%s4568_s2 + $0x160] ss:$8 sps:$4 sm:$0xff]   ;;  %v3191_v17 = vld [vmem:[%s4568_s2 + $0x174] ss:$8 sps:$4 sm:$0xff]  }
  0x25   : > { %1457 = vmatpush1.bf16.msra.mxu0 %v3175_v3  ;;  %s2992_s19 = sshll.u32 %s4582_s25, 6  ;;  %v3193_v18 = vld [vmem:[%s4568_s2 + $0x170] ss:$8 sps:$4 sm:$0xff]   ;;  %v3194_v19 = vld [vmem:[%s4568_s2 + $0x184] ss:$8 sps:$4 sm:$0xff]  }
  0x26   : > { %1458 = vmatprep.subr.bf16.mxu0 %v3176_v4  ;;  %s3625_s24 = scalar_lea.vmem %s4567_s1, %s2992_s19  ;;  %v3196_v20 = vld [vmem:[%s4568_s2 + $0x180] ss:$8 sps:$4 sm:$0xff]   ;;  %v3197_v21 = vld [vmem:[%s4568_s2 + $0x194] ss:$8 sps:$4 sm:$0xff]   ;;  %v3199_v22 = vld [vmem:[%s4568_s2 + $0x190] ss:$8 sps:$4 sm:$0xff]  }
  0x27   : > { %v418_v13 = vld [vmem:[%s3625_s24 + $0x18] sm:$0xff]  ;;  %v3200_v23 = vld [vmem:[%s4568_s2 + $0x1a4] ss:$8 sps:$4 sm:$0xff]   ;;  %v3202_v24 = vld [vmem:[%s4568_s2 + $0x1a0] ss:$8 sps:$4 sm:$0xff]   ;;  %s2811_s19 = sshll.u32 %s4582_s25, 3 }
  0x28   : > { %v426_v14 = vld [vmem:[%s3625_s24 + $0x58] sm:$0xff]  ;;  %v3206_v27 = vld [vmem:[%s4568_s2 + $0x1c4] ss:$8 sps:$4 sm:$0xff]   ;;  %v3208_v28 = vld [vmem:[%s4568_s2 + $0x1c0] ss:$8 sps:$4 sm:$0xff]   ;;  %s4527_s22 = scalar_lea.vmem %s4574_s8, %s2811_s19 }
  0x29   : > { %1459 = vmatpush1.bf16.msra.mxu0 %v3178_v5  ;;  %v530_v15 = vpack.c.bf16 %v426_v14, %v418_v13  ;;  %v3203_v25 = vld [vmem:[%s4568_s2 + $0x1b4] ss:$8 sps:$4 sm:$0xff]   ;;  %v3205_v26 = vld [vmem:[%s4568_s2 + $0x1b0] ss:$8 sps:$4 sm:$0xff]   ;;  %v3212_v31 = vld [vmem:[%s4568_s2 + $0x1e4] ss:$8 sps:$4 sm:$0xff]  }
  0x2a   : > { %1460 = vmatprep.subr.bf16.mxu0 %v3179_v6  ;;  %v3209_v29 = vld [vmem:[%s4568_s2 + $0x1d4] ss:$8 sps:$4 sm:$0xff]   ;;  %v3211_v30 = vld [vmem:[%s4568_s2 + $0x1d0] ss:$8 sps:$4 sm:$0xff]   ;;  %v3266_v32 = vld [vmem:[%s4568_s2 + $0x4] ss:$8 sps:$4 sm:$0xff]  }
  0x2b   : > { %1486 = vmatprep.mubr.bf16.mxu0 %v530_v15  ;;  %v3268_v33 = vld [vmem:[%s4568_s2] ss:$8 sps:$4 sm:$0xff]   ;;  %1351 = vmatprep.subr.bf16.mxu1 %v3266_v32  ;;  %v3215_v35 = vld [vmem:[%s4568_s2 + $0x1f4] ss:$8 sps:$4 sm:$0xff]   ;;  %v3217_v37 = vld [vmem:[%s4568_s2 + $0x1f0] ss:$8 sps:$4 sm:$0xff]  }
  0x2c   : > { %v3214_v34 = vld [vmem:[%s4568_s2 + $0x1e0] ss:$8 sps:$4 sm:$0xff]   ;;  %1352 = vmatpush1.bf16.msra.mxu1 %v3268_v33  ;;  %v3272_v36 = vld [vmem:[%s4568_s2 + $0x14] ss:$8 sps:$4 sm:$0xff]   ;;  %v3274_v39 = vld [vmem:[%s4568_s2 + $0x10] ss:$8 sps:$4 sm:$0xff]  }
  0x2d   : > { %1461 = vmatpush1.bf16.msra.mxu0 %v3181_v7  ;;  %v417_v38 = vld [vmem:[%s3625_s24 + $0x10] sm:$0xff]  ;;  %v3220_v40 = vld [vmem:[%s4568_s2 + $0x204] ss:$8 sps:$4 sm:$0xff]   ;;  %v434_v42 = vld [vmem:[%s3625_s24 + $0x98] sm:$0xff]  ;;  %1353 = vmatprep.subr.bf16.mxu1 %v3272_v36 }
  0x2e   : > { %1462 = vmatprep.subr.bf16.mxu0 %v3182_v8  ;;  %v425_v41 = vld [vmem:[%s3625_s24 + $0x50] sm:$0xff]  ;;  %v3278_v43 = vld [vmem:[%s4568_s2 + $0x24] ss:$8 sps:$4 sm:$0xff]   ;;  %v3280_v44 = vld [vmem:[%s4568_s2 + $0x20] ss:$8 sps:$4 sm:$0xff]  }
  0x2f   : > { %v442_v45 = vld [vmem:[%s3625_s24 + $0xd8] sm:$0xff]  ;;  %v529_v46 = vpack.c.bf16 %v425_v41, %v417_v38  ;;  %v3218_v48 = vld [vmem:[%s4568_s2 + $0x200] ss:$8 sps:$4 sm:$0xff]   ;;  %v3290_v53 = vld [vmem:[%s4568_s2 + $0x44] ss:$8 sps:$4 sm:$0xff]  }
  0x30   : > { %1354 = vmatpush1.bf16.msra.mxu1 %v3274_v39  ;;  %v3284_v47 = vld [vmem:[%s4568_s2 + $0x34] ss:$8 sps:$4 sm:$0xff]   ;;  %v538_v50 = vpack.c.bf16 %v442_v45, %v434_v42  ;;  %v3286_v51 = vld [vmem:[%s4568_s2 + $0x30] ss:$8 sps:$4 sm:$0xff]   ;;  %v3226_v54 = vld [vmem:[%s4568_s2 + $0x224] ss:$8 sps:$4 sm:$0xff]  }
  0x31   : > { %1463 = vmatpush1.bf16.msra.mxu0 %v3184_v9  ;;  %1355 = vmatprep.subr.bf16.mxu1 %v3278_v43  ;;  %v3223_v49 = vld [vmem:[%s4568_s2 + $0x214] ss:$8 sps:$4 sm:$0xff]   ;;  %v3221_v52 = vld [vmem:[%s4568_s2 + $0x210] ss:$8 sps:$4 sm:$0xff]   ;;  %v3292_v59 = vld [vmem:[%s4568_s2 + $0x40] ss:$8 sps:$4 sm:$0xff]  }
  0x32   : > { %1464 = vmatprep.subr.bf16.mxu0 %v3185_v10  ;;  %v433_v55 = vld [vmem:[%s3625_s24 + $0x90] sm:$0xff]  ;;  %v450_v57 = vld [vmem:[%s3625_s24 + $0x118] sm:$0xff]  ;;  %v3224_v62 = vld [vmem:[%s4568_s2 + $0x220] ss:$8 sps:$4 sm:$0xff]  }
  0x33   : > { %v441_v56 = vld [vmem:[%s3625_s24 + $0xd0] sm:$0xff]  ;;  %v458_v58 = vld [vmem:[%s3625_s24 + $0x158] sm:$0xff]  ;;  %v3302_v3 = vld [vmem:[%s4568_s2 + $0x64] ss:$8 sps:$4 sm:$0xff]  }
  0x34   : > { %1356 = vmatpush1.bf16.msra.mxu1 %v3280_v44  ;;  %v3296_v60 = vld [vmem:[%s4568_s2 + $0x54] ss:$8 sps:$4 sm:$0xff]   ;;  %v537_v61 = vpack.c.bf16 %v441_v56, %v433_v55  ;;  %v546_v63 = vpack.c.bf16 %v458_v58, %v450_v57  ;;  %v3298_v1 = vld [vmem:[%s4568_s2 + $0x50] ss:$8 sps:$4 sm:$0xff]   ;;  %v3232_v4 = vld [vmem:[%s4568_s2 + $0x244] ss:$8 sps:$4 sm:$0xff]  }
  0x35   : > { %1465 = vmatpush1.bf16.msra.mxu0 %v3187_v11  ;;  %1357 = vmatprep.subr.bf16.mxu1 %v3284_v47  ;;  %v3229_v0 = vld [vmem:[%s4568_s2 + $0x234] ss:$8 sps:$4 sm:$0xff]   ;;  %v3227_v2 = vld [vmem:[%s4568_s2 + $0x230] ss:$8 sps:$4 sm:$0xff]   ;;  %v3304_v9 = vld [vmem:[%s4568_s2 + $0x60] ss:$8 sps:$4 sm:$0xff]  }
  0x36   : > { %1466 = vmatprep.subr.bf16.mxu0 %v3188_v12  ;;  %v449_v5 = vld [vmem:[%s3625_s24 + $0x110] sm:$0xff]  ;;  %v466_v7 = vld [vmem:[%s3625_s24 + $0x198] sm:$0xff]  ;;  %v3230_v12 = vld [vmem:[%s4568_s2 + $0x240] ss:$8 sps:$4 sm:$0xff]  }
  0x37   : > { %v457_v6 = vld [vmem:[%s3625_s24 + $0x150] sm:$0xff]  ;;  %v474_v8 = vld [vmem:[%s3625_s24 + $0x1d8] sm:$0xff]  ;;  %v3244_v32 = vld [vmem:[%s4568_s2 + $0x284] ss:$8 sps:$4 sm:$0xff]  }
  0x38   : > { %1358 = vmatpush1.bf16.msra.mxu1 %v3286_v51  ;;  %v3308_v10 = vld [vmem:[%s4568_s2 + $0x74] ss:$8 sps:$4 sm:$0xff]   ;;  %v545_v11 = vpack.c.bf16 %v457_v6, %v449_v5  ;;  %v554_v14 = vpack.c.bf16 %v474_v8, %v466_v7  ;;  %v3310_v15 = vld [vmem:[%s4568_s2 + $0x70] ss:$8 sps:$4 sm:$0xff]   ;;  %v3338_v44 = vld [vmem:[%s4568_s2 + $0xc4] ss:$8 sps:$4 sm:$0xff]  }
  0x39   : > { %1467 = vmatpush1.bf16.msra.mxu0 %v3190_v16  ;;  %1359 = vmatprep.subr.bf16.mxu1 %v3290_v53  ;;  %v3235_v13 = vld [vmem:[%s4568_s2 + $0x254] ss:$8 sps:$4 sm:$0xff]   ;;  %v3233_v16 = vld [vmem:[%s4568_s2 + $0x250] ss:$8 sps:$4 sm:$0xff]   ;;  %v3340_v51 = vld [vmem:[%s4568_s2 + $0xc0] ss:$8 sps:$4 sm:$0xff]  }
  0x3a   : > { %1468 = vmatprep.subr.bf16.mxu0 %v3191_v17  ;;  %v3314_v17 = vld [vmem:[%s4568_s2 + $0x84] ss:$8 sps:$4 sm:$0xff]   ;;  %v481_v33 = vld [vmem:[%s3625_s24 + $0x210] sm:$0xff]  ;;  %v506_v36 = vld [vmem:[%s3625_s24 + $0x2d8] sm:$0xff] }
  0x3b   : > { %v3332_v38 = vld [vmem:[%s4568_s2 + $0xb4] ss:$8 sps:$4 sm:$0xff]   ;;  %v3334_v43 = vld [vmem:[%s4568_s2 + $0xb0] ss:$8 sps:$4 sm:$0xff]   ;;  %v3248_v53 = vld [vmem:[%s4568_s2 + $0x2a0] ss:$8 sps:$4 sm:$0xff]  }
  0x3c   : > { %1360 = vmatpush1.bf16.msra.mxu1 %v3292_v59  ;;  %v3247_v41 = vld [vmem:[%s4568_s2 + $0x294] ss:$8 sps:$4 sm:$0xff]   ;;  %v3245_v45 = vld [vmem:[%s4568_s2 + $0x290] ss:$8 sps:$4 sm:$0xff]   ;;  %v416_v55 = vld [vmem:[%s3625_s24 + $0x8] sm:$0xff] }
  0x3d   : > { %1469 = vmatpush1.bf16.msra.mxu0 %v3193_v18  ;;  %1361 = vmatprep.subr.bf16.mxu1 %v3296_v60  ;;  %v3238_v18 = vld [vmem:[%s4568_s2 + $0x264] ss:$8 sps:$4 sm:$0xff]   ;;  %v497_v47 = vld [vmem:[%s3625_s24 + $0x290] sm:$0xff]  ;;  %v3254_v7 = vld [vmem:[%s4568_s2 + $0x2c0] ss:$8 sps:$4 sm:$0xff]  }
  0x3e   : > { %1470 = vmatprep.subr.bf16.mxu0 %v3194_v19  ;;  %v465_v19 = vld [vmem:[%s3625_s24 + $0x190] sm:$0xff]  ;;  %v424_v57 = vld [vmem:[%s3625_s24 + $0x48] sm:$0xff] }
  0x3f   : > { %v3253_v58 = vld [vmem:[%s4568_s2 + $0x2b4] ss:$8 sps:$4 sm:$0xff]   ;;  %v3346_v59 = vld [vmem:[%s4568_s2 + $0xd0] ss:$8 sps:$4 sm:$0xff]   ;;  %v528_v60 = vpack.c.bf16 %v424_v57, %v416_v55  ;;  %v3281_v55 = vld [vmem:[%s4568_s2 + $0x320] ss:$8 sps:$4 sm:$0xff]  }
  0x40   : > { %1362 = vmatpush1.bf16.msra.mxu1 %v3298_v1  ;;  %v521_v1 = vld [vmem:[%s3625_s24 + $0x350] sm:$0xff] }
  0x41   : > { %1471 = vmatpush1.bf16.msra.mxu0 %v3196_v20  ;;  %1363 = vmatprep.subr.bf16.mxu1 %v3302_v3  ;;  %v473_v20 = vld [vmem:[%s3625_s24 + $0x1d0] sm:$0xff]  ;;  %v428_v3 = vld [vmem:[%s3625_s24 + $0x68] sm:$0xff] }
  0x42   : > { %1472 = vmatprep.subr.bf16.mxu0 %v3197_v21  ;;  %v482_v21 = vld [vmem:[%s3625_s24 + $0x218] sm:$0xff]  ;;  %1383 = vmatprep.mubr.bf16.mxu1 %v528_v60 }
  0x43   : > { %v3356_v5 = vld [vmem:[%s4568_s2 + $0xf4] ss:$8 sps:$4 sm:$0xff]   ;;  %v3371_v60 = vld [vmem:[%s4570_s4 + $0x30] ss:$8 sps:$4 sm:$0xff]  }
  0x44   : > { %1364 = vmatpush1.bf16.msra.mxu1 %v3304_v9  ;;  %v3259_v8 = vld [vmem:[%s4568_s2 + $0x2d4] ss:$8 sps:$4 sm:$0xff]  }
  0x45   : > { %1473 = vmatpush1.bf16.msra.mxu0 %v3199_v22  ;;  %1365 = vmatprep.subr.bf16.mxu1 %v3308_v10  ;;  %v490_v22 = vld [vmem:[%s3625_s24 + $0x258] sm:$0xff] }
  0x46   : > { %1474 = vmatprep.subr.bf16.mxu0 %v3200_v23  ;;  %v3316_v23 = vld [vmem:[%s4568_s2 + $0x80] ss:$8 sps:$4 sm:$0xff]   ;;  %v3358_v10 = vld [vmem:[%s4568_s2 + $0xf0] ss:$8 sps:$4 sm:$0xff]   ;;  %v3289_v57 = vld [vmem:[%s4568_s2 + $0x334] ss:$8 sps:$4 sm:$0xff]  }
  0x48   : > { %1366 = vmatpush1.bf16.msra.mxu1 %v3310_v15  ;;  %v3257_v15 = vld [vmem:[%s4568_s2 + $0x2d0] ss:$8 sps:$4 sm:$0xff]  }
  0x49   : > { %1475 = vmatpush1.bf16.msra.mxu0 %v3202_v24  ;;  %1367 = vmatprep.subr.bf16.mxu1 %v3314_v17  ;;  %v3320_v24 = vld [vmem:[%s4568_s2 + $0x94] ss:$8 sps:$4 sm:$0xff]   ;;  %v3262_v17 = vld [vmem:[%s4568_s2 + $0x2e4] ss:$8 sps:$4 sm:$0xff]  }
  0x4a   : > { %1476 = vmatprep.subr.bf16.mxu0 %v3203_v25  ;;  %v553_v25 = vpack.c.bf16 %v473_v20, %v465_v19  ;;  %v3260_v19 = vld [vmem:[%s4568_s2 + $0x2e0] ss:$8 sps:$4 sm:$0xff]   ;;  %v3265_v20 = vld [vmem:[%s4568_s2 + $0x2f4] ss:$8 sps:$4 sm:$0xff]  }
  0x4c   : > { %1368 = vmatpush1.bf16.msra.mxu1 %v3316_v23  ;;  %v3263_v23 = vld [vmem:[%s4568_s2 + $0x2f0] ss:$8 sps:$4 sm:$0xff]  }
  0x4d   : > { %1477 = vmatpush1.bf16.msra.mxu0 %v3205_v26  ;;  %v3236_v26 = vld [vmem:[%s4568_s2 + $0x260] ss:$8 sps:$4 sm:$0xff]   ;;  %1369 = vmatprep.subr.bf16.mxu1 %v3320_v24 }
  0x4e   : > { %1478 = vmatprep.subr.bf16.mxu0 %v3206_v27  ;;  %v3241_v27 = vld [vmem:[%s4568_s2 + $0x274] ss:$8 sps:$4 sm:$0xff]   ;;  %v419_v24 = vld [vmem:[%s3625_s24 + $0x20] sm:$0xff] }
  0x51   : > { %1479 = vmatpush1.bf16.msra.mxu0 %v3208_v28  ;;  %v562_v28 = vpack.c.bf16 %v490_v22, %v482_v21  ;;  %v431_v21 = vld [vmem:[%s3625_s24 + $0x80] sm:$0xff] }
  0x52   : > { %1480 = vmatprep.subr.bf16.mxu0 %v3209_v29  ;;  %v3322_v29 = vld [vmem:[%s4568_s2 + $0x90] ss:$8 sps:$4 sm:$0xff]   ;;  %v439_v22 = vld [vmem:[%s3625_s24 + $0xc0] sm:$0xff] }
  0x53   : > { %1370 = vmatpush1.bf16.msra.mxu1 %v3322_v29  ;;  %v436_v29 = vld [vmem:[%s3625_s24 + $0xa8] sm:$0xff] }
  0x55   : > { %1481 = vmatpush1.bf16.msra.mxu0 %v3211_v30  ;;  %v3326_v30 = vld [vmem:[%s4568_s2 + $0xa4] ss:$8 sps:$4 sm:$0xff]  }
  0x56   : > { %1482 = vmatprep.subr.bf16.mxu0 %v3212_v31  ;;  %v3239_v31 = vld [vmem:[%s4568_s2 + $0x270] ss:$8 sps:$4 sm:$0xff]   ;;  %1371 = vmatprep.subr.bf16.mxu1 %v3326_v30  ;;  %v535_v30 = vpack.c.bf16 %v439_v22, %v431_v21  ;;  %v504_v21 = vld [vmem:[%s3625_s24 + $0x2c8] sm:$0xff] }
  0x57   : > { %v3380_v22 = vld [vmem:[%s4570_s4 + $0x60] ss:$8 sps:$4 sm:$0xff]  }
  0x59   : > { %1483 = vmatpush1.bf16.msra.mxu0 %v3214_v34  ;;  %v489_v34 = vld [vmem:[%s3625_s24 + $0x250] sm:$0xff] }
  0x5a   : > { %1484 = vmatprep.subr.bf16.mxu0 %v3215_v35  ;;  %v498_v35 = vld [vmem:[%s3625_s24 + $0x298] sm:$0xff]  ;;  %v561_v39 = vpack.c.bf16 %v489_v34, %v481_v33  ;;  %v444_v33 = vld [vmem:[%s3625_s24 + $0xe8] sm:$0xff] }
  0x5b   : > { %v570_v42 = vpack.c.bf16 %v506_v36, %v498_v35  ;;  %v3269_v35 = vld [vmem:[%s4568_s2 + $0x300] ss:$8 sps:$4 sm:$0xff]   ;;  %v3367_v36 = vld [vmem:[%s4570_s4 + $0x14] ss:$8 sps:$4 sm:$0xff]  }
  0x5d   : > { %1485 = vmatpush1.bf16.msra.mxu0 %v3217_v37  ;;  %v3328_v37 = vld [vmem:[%s4568_s2 + $0xa0] ss:$8 sps:$4 sm:$0xff]  }
  0x5e   : > { %1557 = vmatprep.subr.bf16.mxu0 %v3220_v40  ;;  %v3242_v40 = vld [vmem:[%s4568_s2 + $0x280] ss:$8 sps:$4 sm:$0xff]   ;;  %1372 = vmatpush1.bf16.msra.mxu1 %v3328_v37 }
  0x5f   : > { %1373 = vmatprep.subr.bf16.mxu1 %v3332_v38  ;;  %v3277_v38 = vld [vmem:[%s4568_s2 + $0x314] ss:$8 sps:$4 sm:$0xff]  }
  0x60   : > { %1487 = vmatmul.mubr.bf16.vlgmr.msra.gmra.mrb[0].mxu0 %v529_v46  ;;  %v3250_v46 = vld [vmem:[%s4568_s2 + $0x2a4] ss:$8 sps:$4 sm:$0xff]  }
  0x61   : > { %1558 = vmatpush1.bf16.msra.mxu0 %v3218_v48  ;;  %1496 = vmatprep.mubr.bf16.mxu0 %v538_v50  ;;  %v505_v48 = vld [vmem:[%s3625_s24 + $0x2d0] sm:$0xff]  ;;  %v522_v50 = vld [vmem:[%s3625_s24 + $0x358] sm:$0xff] }
  0x62   : > { %1559 = vmatprep.subr.bf16.mxu0 %v3223_v49  ;;  %v514_v49 = vld [vmem:[%s3625_s24 + $0x318] sm:$0xff]  ;;  %1374 = vmatpush1.bf16.msra.mxu1 %v3334_v43  ;;  %v464_v43 = vld [vmem:[%s3625_s24 + $0x188] sm:$0xff] }
  0x63   : > { %1375 = vmatprep.subr.bf16.mxu1 %v3338_v44  ;;  %v578_v56 = vpack.c.bf16 %v522_v50, %v514_v49  ;;  %v3370_v44 = vld [vmem:[%s4570_s4 + $0x24] ss:$8 sps:$4 sm:$0xff]   ;;  %v3368_v49 = vld [vmem:[%s4570_s4 + $0x20] ss:$8 sps:$4 sm:$0xff]  }
  0x64   : > { %v443_v50 = vld [vmem:[%s3625_s24 + $0xe0] sm:$0xff] }
  0x65   : > { %1560 = vmatpush1.bf16.msra.mxu0 %v3221_v52  ;;  %v3344_v52 = vld [vmem:[%s4568_s2 + $0xd4] ss:$8 sps:$4 sm:$0xff]  }
  0x66   : > { %1561 = vmatprep.subr.bf16.mxu0 %v3226_v54  ;;  %v569_v54 = vpack.c.bf16 %v505_v48, %v497_v47  ;;  %1376 = vmatpush1.bf16.msra.mxu1 %v3340_v51  ;;  %v3283_v47 = vld [vmem:[%s4568_s2 + $0x324] ss:$8 sps:$4 sm:$0xff]  }
  0x67   : > { %1377 = vmatprep.subr.bf16.mxu1 %v3344_v52  ;;  %v435_v48 = vld [vmem:[%s3625_s24 + $0xa0] sm:$0xff]  ;;  %v452_v51 = vld [vmem:[%s3625_s24 + $0x128] sm:$0xff] }
  0x68   : > { %1497 = vmatmul.mubr.bf16.gmra.mrb[4].mxu0 %v537_v61  ;;  %v3350_v61 = vld [vmem:[%s4568_s2 + $0xe4] ss:$8 sps:$4 sm:$0xff]  }
  0x69   : > { %1562 = vmatpush1.bf16.msra.mxu0 %v3224_v62  ;;  %1506 = vmatprep.mubr.bf16.mxu0 %v546_v63  ;;  %v3251_v62 = vld [vmem:[%s4568_s2 + $0x2b0] ss:$8 sps:$4 sm:$0xff]   ;;  %v3256_v63 = vld [vmem:[%s4568_s2 + $0x2c4] ss:$8 sps:$4 sm:$0xff]  }
  0x6a   : > { %1563 = vmatprep.subr.bf16.mxu0 %v3229_v0  ;;  %v513_v0 = vld [vmem:[%s3625_s24 + $0x310] sm:$0xff]  ;;  %1378 = vmatpush1.bf16.msra.mxu1 %v3346_v59  ;;  %v463_v59 = vld [vmem:[%s3625_s24 + $0x180] sm:$0xff] }
  0x6b   : > { %1379 = vmatprep.subr.bf16.mxu1 %v3350_v61  ;;  %v577_v6 = vpack.c.bf16 %v521_v1, %v513_v0  ;;  %v3376_v0 = vld [vmem:[%s4570_s4 + $0x44] ss:$8 sps:$4 sm:$0xff]   ;;  %v3287_v1 = vld [vmem:[%s4568_s2 + $0x330] ss:$8 sps:$4 sm:$0xff]  }
  0x6d   : > { %1564 = vmatpush1.bf16.msra.mxu0 %v3227_v2  ;;  %v420_v2 = vld [vmem:[%s3625_s24 + $0x28] sm:$0xff] }
  0x6e   : > { %1565 = vmatprep.subr.bf16.mxu0 %v3232_v4  ;;  %v3352_v4 = vld [vmem:[%s4568_s2 + $0xe0] ss:$8 sps:$4 sm:$0xff]   ;;  %v532_v9 = vpack.c.bf16 %v428_v3, %v420_v2 }
  0x6f   : > { %1380 = vmatpush1.bf16.msra.mxu1 %v3352_v4  ;;  %v451_v2 = vld [vmem:[%s3625_s24 + $0x120] sm:$0xff]  ;;  %v488_v4 = vld [vmem:[%s3625_s24 + $0x248] sm:$0xff] }
  0x70   : > { %1507 = vmatmul.mubr.bf16.gmra.mrb[8].mxu0 %v545_v11  ;;  %v415_v11 = vld [vmem:[%s3625_s24] sm:$0xff]  ;;  %1381 = vmatprep.subr.bf16.mxu1 %v3356_v5 }
  0x71   : > { %1566 = vmatpush1.bf16.msra.mxu0 %v3230_v12  ;;  %1516 = vmatprep.mubr.bf16.mxu0 %v554_v14  ;;  %v423_v12 = vld [vmem:[%s3625_s24 + $0x40] sm:$0xff]  ;;  %v440_v14 = vld [vmem:[%s3625_s24 + $0xc8] sm:$0xff] }
  0x72   : > { %1567 = vmatprep.subr.bf16.mxu0 %v3235_v13  ;;  %v432_v13 = vld [vmem:[%s3625_s24 + $0x88] sm:$0xff]  ;;  %v459_v3 = vld [vmem:[%s3625_s24 + $0x160] sm:$0xff] }
  0x73   : > { %1382 = vmatpush1.bf16.msra.mxu1 %v3358_v10  ;;  %v3295_v5 = vld [vmem:[%s4568_s2 + $0x344] ss:$8 sps:$4 sm:$0xff]   ;;  %v3379_v10 = vld [vmem:[%s4570_s4 + $0x54] ss:$8 sps:$4 sm:$0xff]  }
  0x75   : > { %1568 = vmatpush1.bf16.msra.mxu0 %v3233_v16  ;;  %v527_v16 = vpack.c.bf16 %v423_v12, %v415_v11  ;;  %v3377_v12 = vld [vmem:[%s4570_s4 + $0x50] ss:$8 sps:$4 sm:$0xff]  }
  0x76   : > { %1569 = vmatprep.subr.bf16.mxu0 %v3238_v18  ;;  %v536_v18 = vpack.c.bf16 %v440_v14, %v432_v13  ;;  %v3293_v13 = vld [vmem:[%s4568_s2 + $0x340] ss:$8 sps:$4 sm:$0xff]   ;;  %v3301_v14 = vld [vmem:[%s4568_s2 + $0x354] ss:$8 sps:$4 sm:$0xff]  }
  0x77   : > { %1384 = vmatmul.mubr.bf16.vlgmr.msra.gmra.mrb[0].mxu1 %v527_v16  ;;  %v479_v16 = vld [vmem:[%s3625_s24 + $0x200] sm:$0xff] }
  0x78   : > { %1517 = vmatmul.mubr.bf16.gmra.mrb[12].mxu0 %v553_v25  ;;  %1393 = vmatprep.mubr.bf16.mxu1 %v536_v18  ;;  %v448_v25 = vld [vmem:[%s3625_s24 + $0x108] sm:$0xff] }
  0x79   : > { %1570 = vmatpush1.bf16.msra.mxu0 %v3236_v26  ;;  %1526 = vmatprep.mubr.bf16.mxu0 %v562_v28  ;;  %v456_v26 = vld [vmem:[%s3625_s24 + $0x148] sm:$0xff]  ;;  %v427_v28 = vld [vmem:[%s3625_s24 + $0x60] sm:$0xff] }
  0x7a   : > { %1571 = vmatprep.subr.bf16.mxu0 %v3241_v27  ;;  %v3271_v27 = vld [vmem:[%s4568_s2 + $0x304] ss:$8 sps:$4 sm:$0xff]   ;;  %v544_v34 = vpack.c.bf16 %v456_v26, %v448_v25  ;;  %v531_v37 = vpack.c.bf16 %v427_v28, %v419_v24 }
  0x7b   : > { %v3382_v18 = vld [vmem:[%s4570_s4 + $0x64] ss:$8 sps:$4 sm:$0xff]  }
  0x7c   : > { %v467_v24 = vld [vmem:[%s3625_s24 + $0x1a0] sm:$0xff]  ;;  %v492_v28 = vld [vmem:[%s3625_s24 + $0x268] sm:$0xff] }
  0x7d   : > { %1572 = vmatpush1.bf16.msra.mxu0 %v3239_v31  ;;  %v3362_v31 = vld [vmem:[%s4570_s4] ss:$8 sps:$4 sm:$0xff]   ;;  %v3307_v26 = vld [vmem:[%s4568_s2 + $0x364] ss:$8 sps:$4 sm:$0xff]  }
  0x7e   : > { %1573 = vmatprep.subr.bf16.mxu0 %v3244_v32  ;;  %v3364_v32 = vld [vmem:[%s4570_s4 + $0x4] ss:$8 sps:$4 sm:$0xff]  }
  0x7f   : > { %2194 = vmatprep.subr.bf16.mxu1 %v3364_v32  ;;  %1394 = vmatmul.mubr.bf16.gmra.mrb[4].mxu1 %v535_v30  ;;  %v475_v25 = vld [vmem:[%s3625_s24 + $0x1e0] sm:$0xff]  ;;  %v3385_v30 = vld [vmem:[%s4570_s4 + $0x74] ss:$8 sps:$4 sm:$0xff]   ;;  %v3383_v32 = vld [vmem:[%s4570_s4 + $0x70] ss:$8 sps:$4 sm:$0xff]  }
  0x80   : > { %1527 = vmatmul.mubr.bf16.gmra.mrb[16].mxu0 %v561_v39  ;;  %v447_v39 = vld [vmem:[%s3625_s24 + $0x100] sm:$0xff]  ;;  %2195 = vmatpush1.bf16.msra.mxu1 %v3362_v31 }
  0x81   : > { %1574 = vmatpush1.bf16.msra.mxu0 %v3242_v40  ;;  %1536 = vmatprep.mubr.bf16.mxu0 %v570_v42  ;;  %v3365_v40 = vld [vmem:[%s4570_s4 + $0x10] ss:$8 sps:$4 sm:$0xff]   ;;  %v455_v42 = vld [vmem:[%s3625_s24 + $0x140] sm:$0xff] }
  0x82   : > { %1575 = vmatprep.subr.bf16.mxu0 %v3247_v41  ;;  %v540_v41 = vpack.c.bf16 %v444_v33, %v436_v29  ;;  %1403 = vmatprep.mubr.bf16.mxu1 %v544_v34  ;;  %v543_v52 = vpack.c.bf16 %v455_v42, %v447_v39  ;;  %v3305_v33 = vld [vmem:[%s4568_s2 + $0x360] ss:$8 sps:$4 sm:$0xff]   ;;  %v3313_v34 = vld [vmem:[%s4568_s2 + $0x374] ss:$8 sps:$4 sm:$0xff]   ;;  %v3388_v39 = vld [vmem:[%s4570_s4 + $0x84] ss:$8 sps:$4 sm:$0xff]  }
  0x83   : > { %2196 = vmatprep.subr.bf16.mxu1 %v3367_v36  ;;  %v3386_v42 = vld [vmem:[%s4570_s4 + $0x80] ss:$8 sps:$4 sm:$0xff]  }
  0x84   : > { %2197 = vmatpush1.bf16.msra.mxu1 %v3365_v40  ;;  %v512_v40 = vld [vmem:[%s3625_s24 + $0x308] sm:$0xff] }
  0x85   : > { %1576 = vmatpush1.bf16.msra.mxu0 %v3245_v45  ;;  %v3275_v45 = vld [vmem:[%s4568_s2 + $0x310] ss:$8 sps:$4 sm:$0xff]   ;;  %2198 = vmatprep.subr.bf16.mxu1 %v3370_v44  ;;  %v483_v44 = vld [vmem:[%s3625_s24 + $0x220] sm:$0xff] }
  0x86   : > { %1577 = vmatprep.subr.bf16.mxu0 %v3250_v46  ;;  %v472_v46 = vld [vmem:[%s3625_s24 + $0x1c8] sm:$0xff] }
  0x87   : > { %1404 = vmatmul.mubr.bf16.gmra.mrb[8].mxu1 %v543_v52 }
  0x88   : > { %1537 = vmatmul.mubr.bf16.gmra.mrb[20].mxu0 %v569_v54  ;;  %v552_v54 = vpack.c.bf16 %v472_v46, %v464_v43  ;;  %2199 = vmatpush1.bf16.msra.mxu1 %v3368_v49  ;;  %v3311_v43 = vld [vmem:[%s4568_s2 + $0x370] ss:$8 sps:$4 sm:$0xff]   ;;  %v508_v49 = vld [vmem:[%s3625_s24 + $0x2e8] sm:$0xff] }
  0x89   : > { %1578 = vmatpush1.bf16.msra.mxu0 %v3248_v53  ;;  %1546 = vmatprep.mubr.bf16.mxu0 %v578_v56  ;;  %v460_v53 = vld [vmem:[%s3625_s24 + $0x168] sm:$0xff]  ;;  %v3373_v56 = vld [vmem:[%s4570_s4 + $0x34] ss:$8 sps:$4 sm:$0xff]  }
  0x8a   : > { %1579 = vmatprep.subr.bf16.mxu0 %v3253_v58  ;;  %v539_v58 = vpack.c.bf16 %v443_v50, %v435_v48  ;;  %v548_v61 = vpack.c.bf16 %v460_v53, %v452_v51  ;;  %1413 = vmatprep.mubr.bf16.mxu1 %v552_v54  ;;  %v500_v48 = vld [vmem:[%s3625_s24 + $0x2a8] sm:$0xff]  ;;  %v3391_v51 = vld [vmem:[%s4570_s4 + $0x94] ss:$8 sps:$4 sm:$0xff]   ;;  %v3389_v53 = vld [vmem:[%s4570_s4 + $0x90] ss:$8 sps:$4 sm:$0xff]  }
  0x8b   : > { %2200 = vmatprep.subr.bf16.mxu1 %v3373_v56  ;;  %v3317_v54 = vld [vmem:[%s4568_s2 + $0x380] ss:$8 sps:$4 sm:$0xff]   ;;  %v572_v56 = vpack.c.bf16 %v508_v49, %v500_v48  ;;  %v494_v48 = vld [vmem:[%s3625_s24 + $0x278] sm:$0xff] }
  0x8c   : > { %2201 = vmatpush1.bf16.msra.mxu1 %v3371_v60  ;;  %v3323_v60 = vld [vmem:[%s4568_s2 + $0x390] ss:$8 sps:$4 sm:$0xff]  }
  0x8d   : > { %1580 = vmatpush1.bf16.msra.mxu0 %v3251_v62  ;;  %v471_v62 = vld [vmem:[%s3625_s24 + $0x1c0] sm:$0xff]  ;;  %2202 = vmatprep.subr.bf16.mxu1 %v3376_v0 }
  0x8e   : > { %1581 = vmatprep.subr.bf16.mxu0 %v3256_v63  ;;  %v480_v63 = vld [vmem:[%s3625_s24 + $0x208] sm:$0xff]  ;;  %v507_v0 = vld [vmem:[%s3625_s24 + $0x2e0] sm:$0xff] }
  0x8f   : > { %v560_v11 = vpack.c.bf16 %v488_v4, %v480_v63  ;;  %v499_v63 = vld [vmem:[%s3625_s24 + $0x2a0] sm:$0xff]  ;;  %v3397_v4 = vld [vmem:[%s4570_s4 + $0xb4] ss:$8 sps:$4 sm:$0xff]  }
  0x90   : > { %1547 = vmatmul.mubr.bf16.gmra.mrb[24].mxu0 %v577_v6  ;;  %v468_v6 = vld [vmem:[%s3625_s24 + $0x1a8] sm:$0xff] }
  0x91   : > { %1582 = vmatpush1.bf16.msra.mxu0 %v3254_v7  ;;  %1589 = vmatprep.mubr.bf16.mxu0 %v532_v9  ;;  %v476_v7 = vld [vmem:[%s3625_s24 + $0x1e8] sm:$0xff]  ;;  %v551_v9 = vpack.c.bf16 %v471_v62, %v463_v59 }
  0x92   : > { %1583 = vmatprep.subr.bf16.mxu0 %v3259_v8  ;;  %v3374_v8 = vld [vmem:[%s4570_s4 + $0x40] ss:$8 sps:$4 sm:$0xff]   ;;  %v3394_v59 = vld [vmem:[%s4570_s4 + $0xa4] ss:$8 sps:$4 sm:$0xff]  }
  0x93   : > { %2203 = vmatpush1.bf16.msra.mxu1 %v3374_v8  ;;  %v3331_v62 = vld [vmem:[%s4568_s2 + $0x3a4] ss:$8 sps:$4 sm:$0xff]  }
  0x94   : > { %1414 = vmatmul.mubr.bf16.gmra.mrb[12].mxu1 %v551_v9  ;;  %2204 = vmatprep.subr.bf16.mxu1 %v3379_v10  ;;  %v3337_v9 = vld [vmem:[%s4568_s2 + $0x3b4] ss:$8 sps:$4 sm:$0xff]   ;;  %v3335_v10 = vld [vmem:[%s4568_s2 + $0x3b0] ss:$8 sps:$4 sm:$0xff]  }
  0x95   : > { %1584 = vmatpush1.bf16.msra.mxu0 %v3257_v15  ;;  %v547_v15 = vpack.c.bf16 %v459_v3, %v451_v2  ;;  %1423 = vmatprep.mubr.bf16.mxu1 %v560_v11  ;;  %v516_v2 = vld [vmem:[%s3625_s24 + $0x328] sm:$0xff]  ;;  %v515_v11 = vld [vmem:[%s3625_s24 + $0x320] sm:$0xff] }
  0x96   : > { %1585 = vmatprep.subr.bf16.mxu0 %v3262_v17  ;;  %v487_v17 = vld [vmem:[%s3625_s24 + $0x240] sm:$0xff]  ;;  %v524_v3 = vld [vmem:[%s3625_s24 + $0x368] sm:$0xff] }
  0x97   : > { %2205 = vmatpush1.bf16.msra.mxu1 %v3377_v12  ;;  %v559_v29 = vpack.c.bf16 %v487_v17, %v479_v16  ;;  %v580_v8 = vpack.c.bf16 %v524_v3, %v516_v2  ;;  %v523_v12 = vld [vmem:[%s3625_s24 + $0x360] sm:$0xff]  ;;  %v3403_v2 = vld [vmem:[%s4570_s4 + $0xd4] ss:$8 sps:$4 sm:$0xff]   ;;  %v3401_v3 = vld [vmem:[%s4570_s4 + $0xd0] ss:$8 sps:$4 sm:$0xff]  }
  0x98   : > { %2206 = vmatprep.subr.bf16.mxu1 %v3382_v18  ;;  %v579_v16 = vpack.c.bf16 %v523_v12, %v515_v11  ;;  %v3341_v17 = vld [vmem:[%s4568_s2 + $0x3c0] ss:$8 sps:$4 sm:$0xff]  }
  0x99   : > { %1586 = vmatpush1.bf16.msra.mxu0 %v3260_v19  ;;  %v556_v19 = vpack.c.bf16 %v476_v7, %v468_v6  ;;  %v3395_v6 = vld [vmem:[%s4570_s4 + $0xb0] ss:$8 sps:$4 sm:$0xff]   ;;  %v3329_v7 = vld [vmem:[%s4568_s2 + $0x3a0] ss:$8 sps:$4 sm:$0xff]  }
  0x9a   : > { %1587 = vmatprep.subr.bf16.mxu0 %v3265_v20  ;;  %v496_v20 = vld [vmem:[%s3625_s24 + $0x288] sm:$0xff] }
  0x9b   : > { %v568_v31 = vpack.c.bf16 %v504_v21, %v496_v20  ;;  %2207 = vmatpush1.bf16.msra.mxu1 %v3380_v22  ;;  %v3347_v20 = vld [vmem:[%s4568_s2 + $0x3d0] ss:$8 sps:$4 sm:$0xff]   ;;  %v3355_v21 = vld [vmem:[%s4568_s2 + $0x3e4] ss:$8 sps:$4 sm:$0xff]   ;;  %v3353_v22 = vld [vmem:[%s4568_s2 + $0x3e0] ss:$8 sps:$4 sm:$0xff]  }
  0x9c   : > { %1424 = vmatmul.mubr.bf16.gmra.mrb[16].mxu1 %v559_v29  ;;  %2208 = vmatprep.subr.bf16.mxu1 %v3385_v30 }
  0x9d   : > { %1588 = vmatpush1.bf16.msra.mxu0 %v3263_v23  ;;  %v3299_v23 = vld [vmem:[%s4568_s2 + $0x350] ss:$8 sps:$4 sm:$0xff]   ;;  %1433 = vmatprep.mubr.bf16.mxu1 %v568_v31 }
  0x9e   : > { %1660 = vmatprep.subr.bf16.mxu0 %v3271_v27  ;;  %v484_v27 = vld [vmem:[%s3625_s24 + $0x228] sm:$0xff]  ;;  %v437_v31 = vld [vmem:[%s3625_s24 + $0xb0] sm:$0xff] }
  0x9f   : > { %v564_v36 = vpack.c.bf16 %v492_v28, %v484_v27  ;;  %2209 = vmatpush1.bf16.msra.mxu1 %v3383_v32  ;;  %v438_v27 = vld [vmem:[%s3625_s24 + $0xb8] sm:$0xff]  ;;  %v445_v32 = vld [vmem:[%s3625_s24 + $0xf0] sm:$0xff] }
  0xa0   : > { %1590 = vmatmul.mubr.bf16.vlgmr.msra.gmra.mrb[0].mxu0 %v531_v37  ;;  %v495_v37 = vld [vmem:[%s3625_s24 + $0x280] sm:$0xff]  ;;  %2210 = vmatprep.subr.bf16.mxu1 %v3388_v39  ;;  %v446_v28 = vld [vmem:[%s3625_s24 + $0xf8] sm:$0xff] }
  0xa1   : > { %1661 = vmatpush1.bf16.msra.mxu0 %v3269_v35  ;;  %1599 = vmatprep.mubr.bf16.mxu0 %v540_v41  ;;  %v555_v35 = vpack.c.bf16 %v475_v25, %v467_v24  ;;  %v520_v41 = vld [vmem:[%s3625_s24 + $0x348] sm:$0xff]  ;;  %v3359_v24 = vld [vmem:[%s4568_s2 + $0x3f0] ss:$8 sps:$4 sm:$0xff]   ;;  %v542_v30 = vpack.c.bf16 %v446_v28, %v438_v27 }
  0xa2   : > { %1662 = vmatprep.subr.bf16.mxu0 %v3277_v38  ;;  %v503_v38 = vld [vmem:[%s3625_s24 + $0x2c0] sm:$0xff]  ;;  %v576_v50 = vpack.c.bf16 %v520_v41, %v512_v40  ;;  %v421_v25 = vld [vmem:[%s3625_s24 + $0x30] sm:$0xff]  ;;  %v470_v41 = vld [vmem:[%s3625_s24 + $0x1b8] sm:$0xff] }
  0xa3   : > { %v567_v46 = vpack.c.bf16 %v503_v38, %v495_v37  ;;  %2211 = vmatpush1.bf16.msra.mxu1 %v3386_v42  ;;  %v453_v37 = vld [vmem:[%s3625_s24 + $0x130] sm:$0xff]  ;;  %v3398_v39 = vld [vmem:[%s4570_s4 + $0xc0] ss:$8 sps:$4 sm:$0xff]   ;;  %v3400_v40 = vld [vmem:[%s4570_s4 + $0xc4] ss:$8 sps:$4 sm:$0xff]  }
  0xa4   : > { %2212 = vmatprep.subr.bf16.mxu1 %v3391_v51  ;;  %v461_v38 = vld [vmem:[%s3625_s24 + $0x170] sm:$0xff]  ;;  %v478_v42 = vld [vmem:[%s3625_s24 + $0x1f8] sm:$0xff] }
  0xa5   : > { %1663 = vmatpush1.bf16.msra.mxu0 %v3275_v45  ;;  %v491_v45 = vld [vmem:[%s3625_s24 + $0x260] sm:$0xff]  ;;  %1434 = vmatmul.mubr.bf16.gmra.mrb[20].mxu1 %v567_v46  ;;  %v477_v46 = vld [vmem:[%s3625_s24 + $0x1f0] sm:$0xff] }
  0xa6   : > { %1664 = vmatprep.subr.bf16.mxu0 %v3283_v47  ;;  %v3319_v47 = vld [vmem:[%s4568_s2 + $0x384] ss:$8 sps:$4 sm:$0xff]   ;;  %v563_v52 = vpack.c.bf16 %v491_v45, %v483_v44  ;;  %1443 = vmatprep.mubr.bf16.mxu1 %v576_v50  ;;  %v558_v44 = vpack.c.bf16 %v478_v42, %v470_v41  ;;  %v469_v45 = vld [vmem:[%s3625_s24 + $0x1b0] sm:$0xff] }
  0xa7   : > { %2213 = vmatpush1.bf16.msra.mxu1 %v3389_v53  ;;  %v557_v49 = vpack.c.bf16 %v477_v46, %v469_v45  ;;  %v485_v51 = vld [vmem:[%s3625_s24 + $0x230] sm:$0xff]  ;;  %v502_v53 = vld [vmem:[%s3625_s24 + $0x2b8] sm:$0xff] }
  0xa8   : > { %1600 = vmatmul.mubr.bf16.gmra.mrb[4].mxu0 %v539_v58  ;;  %v519_v58 = vld [vmem:[%s3625_s24 + $0x340] sm:$0xff]  ;;  %2214 = vmatprep.subr.bf16.mxu1 %v3394_v59  ;;  %v518_v59 = vld [vmem:[%s3625_s24 + $0x338] sm:$0xff] }
  0xa9   : > { %1665 = vmatpush1.bf16.msra.mxu0 %v3281_v55  ;;  %1609 = vmatprep.mubr.bf16.mxu0 %v548_v61  ;;  %v3325_v55 = vld [vmem:[%s4568_s2 + $0x394] ss:$8 sps:$4 sm:$0xff]   ;;  %v3392_v61 = vld [vmem:[%s4570_s4 + $0xa0] ss:$8 sps:$4 sm:$0xff]  }
  0xaa   : > { %1666 = vmatprep.subr.bf16.mxu0 %v3289_v57  ;;  %v511_v57 = vld [vmem:[%s3625_s24 + $0x300] sm:$0xff] }
  0xab   : > { %2215 = vmatpush1.bf16.msra.mxu1 %v3392_v61 }
  0xac   : > { %2216 = vmatprep.subr.bf16.mxu1 %v3397_v4  ;;  %v3406_v4 = vld [vmem:[%s4570_s4 + $0xe4] ss:$8 sps:$4 sm:$0xff]  }
  0xad   : > { %1667 = vmatpush1.bf16.msra.mxu0 %v3287_v1  ;;  %v575_v1 = vpack.c.bf16 %v519_v58, %v511_v57  ;;  %v501_v57 = vld [vmem:[%s3625_s24 + $0x2b0] sm:$0xff] }
  0xae   : > { %1668 = vmatprep.subr.bf16.mxu0 %v3295_v5  ;;  %v571_v5 = vpack.c.bf16 %v507_v0, %v499_v63  ;;  %v509_v58 = vld [vmem:[%s3625_s24 + $0x2f0] sm:$0xff] }
  0xaf   : > { %1444 = vmatmul.mubr.bf16.gmra.mrb[24].mxu1 %v575_v1  ;;  %v573_v61 = vpack.c.bf16 %v509_v58, %v501_v57  ;;  %v517_v63 = vld [vmem:[%s3625_s24 + $0x330] sm:$0xff] }
  0xb0   : > { %1610 = vmatmul.mubr.bf16.gmra.mrb[8].mxu0 %v547_v15  ;;  %2217 = vmatpush1.bf16.msra.mxu1 %v3395_v6  ;;  %v430_v15 = vld [vmem:[%s3625_s24 + $0x78] sm:$0xff]  ;;  %v525_v0 = vld [vmem:[%s3625_s24 + $0x370] sm:$0xff] }
  0xb1   : > { %1669 = vmatpush1.bf16.msra.mxu0 %v3293_v13  ;;  %1619 = vmatprep.mubr.bf16.mxu0 %v556_v19  ;;  %v3343_v13 = vld [vmem:[%s4568_s2 + $0x3c4] ss:$8 sps:$4 sm:$0xff]   ;;  %v3349_v19 = vld [vmem:[%s4568_s2 + $0x3d4] ss:$8 sps:$4 sm:$0xff]   ;;  %v581_v1 = vpack.c.bf16 %v525_v0, %v517_v63 }
  0xb2   : > { %1670 = vmatprep.subr.bf16.mxu0 %v3301_v14  ;;  %v422_v14 = vld [vmem:[%s3625_s24 + $0x38] sm:$0xff]  ;;  %2218 = vmatprep.subr.bf16.mxu1 %v3400_v40  ;;  %v1850_v40 = vld [vmem:[%s4569_s3] sm:$0x3] }
  0xb3   : > { %v534_v18 = vpack.c.bf16 %v430_v15, %v422_v14  ;;  %v3409_v6 = vld [vmem:[%s4570_s4 + $0xf4] ss:$8 sps:$4 sm:$0xff]   ;;  %v3410_v14 = vld [vmem:[%s4572_s6 + $0x40] sm:$0xff]  }
  0xb4   : > { %2219 = vmatpush1.bf16.msra.mxu1 %v3398_v39 }
  0xb5   : > { %1671 = vmatpush1.bf16.msra.mxu0 %v3299_v23  ;;  %v3361_v23 = vld [vmem:[%s4568_s2 + $0x3f4] ss:$8 sps:$4 sm:$0xff]   ;;  %2220 = vmatprep.subr.bf16.mxu1 %v3403_v2 }
  0xb6   : > { %1672 = vmatprep.subr.bf16.mxu0 %v3307_v26  ;;  %v429_v26 = vld [vmem:[%s3625_s24 + $0x70] sm:$0xff] }
  0xb7   : > { %v533_v29 = vpack.c.bf16 %v429_v26, %v421_v25 }
  0xb8   : > { %1620 = vmatmul.mubr.bf16.gmra.mrb[12].mxu0 %v555_v35  ;;  %v541_v35 = vpack.c.bf16 %v445_v32, %v437_v31  ;;  %2221 = vmatpush1.bf16.msra.mxu1 %v3401_v3 }
  0xb9   : > { %1673 = vmatpush1.bf16.msra.mxu0 %v3305_v33  ;;  %1629 = vmatprep.mubr.bf16.mxu0 %v564_v36  ;;  %v454_v33 = vld [vmem:[%s3625_s24 + $0x138] sm:$0xff] }
  0xba   : > { %1674 = vmatprep.subr.bf16.mxu0 %v3313_v34  ;;  %v462_v34 = vld [vmem:[%s3625_s24 + $0x178] sm:$0xff]  ;;  %2222 = vmatprep.subr.bf16.mxu1 %v3406_v4 }
  0xbb   : > { %v550_v36 = vpack.c.bf16 %v462_v34, %v454_v33 }
  0xbd   : > { %1675 = vmatpush1.bf16.msra.mxu0 %v3311_v43  ;;  %v549_v43 = vpack.c.bf16 %v461_v38, %v453_v37  ;;  %v1852_v37 = vlaneseq }
  0xbe   : > { %1676 = vmatprep.subr.bf16.mxu0 %v3319_v47  ;;  %v486_v47 = vld [vmem:[%s3625_s24 + $0x238] sm:$0xff] }
  0xbf   : > { %v566_v50 = vpack.c.bf16 %v494_v48, %v486_v47  ;;  %v4233_v38 = vshrl.u32 %v1852_v37, 7  ;;  %v4248_v47 = vstv %s1918_s17 }
  0xc0   : > { %1630 = vmatmul.mubr.bf16.gmra.mrb[16].mxu0 %v563_v52  ;;  %v493_v52 = vld [vmem:[%s3625_s24 + $0x270] sm:$0xff] }
  0xc1   : > { %1677 = vmatpush1.bf16.msra.mxu0 %v3317_v54  ;;  %1639 = vmatprep.mubr.bf16.mxu0 %v572_v56  ;;  %v510_v54 = vld [vmem:[%s3625_s24 + $0x2f8] sm:$0xff]  ;;  %v1854_v39 = vsub.s32 0, %v4233_v38  ;;  %v1858_v41 = vsub.s32 1, %v4233_v38 }
  0xc2   : > { %1678 = vmatprep.subr.bf16.mxu0 %v3325_v55  ;;  %v565_v55 = vpack.c.bf16 %v493_v52, %v485_v51  ;;  %v574_v56 = vpack.c.bf16 %v510_v54, %v502_v53 }
  0xc3   : > { %v4242_v42 = vrot.slane %v1850_v40, %v1854_v39 }
  0xc5   : > { %1679 = vmatpush1.bf16.msra.mxu0 %v3323_v60  ;;  %v526_v60 = vld [vmem:[%s3625_s24 + $0x378] sm:$0xff] }
  0xc6   : > { %1680 = vmatprep.subr.bf16.mxu0 %v3331_v62  ;;  %v582_v62 = vpack.c.bf16 %v526_v60, %v518_v59 }
  0xc8   : > { %1640 = vmatmul.mubr.bf16.gmra.mrb[20].mxu0 %v571_v5  ;;  %v3404_v5 = vld [vmem:[%s4570_s4 + $0xe0] ss:$8 sps:$4 sm:$0xff]  }
  0xc9   : > { %1681 = vmatpush1.bf16.msra.mxu0 %v3329_v7  ;;  %1649 = vmatprep.mubr.bf16.mxu0 %v580_v8  ;;  %v3407_v7 = vld [vmem:[%s4570_s4 + $0xf0] ss:$8 sps:$4 sm:$0xff]  }
  0xca   : > { %1682 = vmatprep.subr.bf16.mxu0 %v3337_v9  ;;  %2223 = vmatpush1.bf16.msra.mxu1 %v3404_v5 }
  0xcb   : > { %2224 = vmatprep.subr.bf16.mxu1 %v3409_v6 }
  0xcd   : > { %1683 = vmatpush1.bf16.msra.mxu0 %v3335_v10 }
  0xce   : > { %1684 = vmatprep.subr.bf16.mxu0 %v3343_v13  ;;  %2225 = vmatpush1.bf16.msra.mxu1 %v3407_v7 }
  0xcf   : > { %2993 = vmatprep.subr.bf16.mxu1 %v3410_v14 }
  0xd0   : > { %1650 = vmatmul.mubr.bf16.gmra.mrb[24].mxu0 %v579_v16 }
  0xd1   : > { %1685 = vmatpush1.bf16.msra.mxu0 %v3341_v17  ;;  %1692 = vmatprep.mubr.bf16.mxu0 %v534_v18 }
  0xd2   : > { %1686 = vmatprep.subr.bf16.mxu0 %v3349_v19 }
  0xd5   : > { %1687 = vmatpush1.bf16.msra.mxu0 %v3347_v20 }
  0xd6   : > { %1688 = vmatprep.subr.bf16.mxu0 %v3355_v21 }
  0xd9   : > { %1689 = vmatpush1.bf16.msra.mxu0 %v3353_v22 }
  0xda   : > { %1690 = vmatprep.subr.bf16.mxu0 %v3361_v23 }
  0xdd   : > { %1691 = vmatpush1.bf16.msra.mxu0 %v3359_v24 }
  0xe0   : > { %1693 = vmatmul.mubr.bf16.vlgmr.msra.gmra.mrb[0].mxu0 %v533_v29 }
  0xe1   : > { %1702 = vmatprep.mubr.bf16.mxu0 %v542_v30 }
  0xe8   : > { %1703 = vmatmul.mubr.bf16.gmra.mrb[4].mxu0 %v541_v35 }
  0xe9   : > { %1712 = vmatprep.mubr.bf16.mxu0 %v550_v36 }
  0xf0   : > { %1713 = vmatmul.mubr.bf16.gmra.mrb[8].mxu0 %v549_v43 }
  0xf1   : > { %1722 = vmatprep.mubr.bf16.mxu0 %v558_v44  ;;  %v4246_v44 = vrot.slane %v1850_v40, %v1858_v41 }
  0xf8   : > { %1723 = vmatmul.mubr.bf16.gmra.mrb[12].mxu0 %v557_v49 }
  0xf9   : > { %1732 = vmatprep.mubr.bf16.mxu0 %v566_v50 }
 0x100   : > { %1733 = vmatmul.mubr.bf16.gmra.mrb[16].mxu0 %v565_v55 }
 0x101   : > { %1742 = vmatprep.mubr.bf16.mxu0 %v574_v56 }
 0x108   : > { %1743 = vmatmul.mubr.bf16.gmra.mrb[20].mxu0 %v573_v61 }
 0x109   : > { %1752 = vmatprep.mubr.bf16.mxu0 %v582_v62 }
 0x110   : > { %1753 = vmatmul.mubr.bf16.gmra.mrb[24].mxu0 %v581_v1 }
 0x14a   : > { %v1385_v8 = vpop.f32.mrb[0].mxu1 }
 0x14b   : > { %v1387_v9 = vpop.f32.mrb[1].mxu1 }
 0x14c   : > { %v1389_v10 = vpop.f32.mrb[2].mxu1 }
 0x14d   : > { %v1391_v11 = vpop.f32.mrb[3].mxu1 }
 0x152   : > { %v1395_v12 = vpop.f32.mrb[4].mxu1 }
 0x153   : > { %v1397_v13 = vpop.f32.mrb[5].mxu1 }
 0x154   : > { %v4189_v15 = vpop.f32.mrb[6].mxu1 }
 0x155   : > { %v4191_v16 = vpop.f32.mrb[7].mxu1 }
 0x15a   : > { %v4193_v17 = vpop.f32.mrb[8].mxu1 }
 0x15b   : > { %v4195_v18 = vpop.f32.mrb[9].mxu1 }
 0x15c   : > { %v4197_v19 = vpop.f32.mrb[10].mxu1 }
 0x15d   : > { %v4199_v20 = vpop.f32.mrb[11].mxu1 }
 0x167   : > { %v4201_v21 = vpop.f32.mrb[12].mxu1 }
 0x168   : > { %v4203_v22 = vpop.f32.mrb[13].mxu1 }
 0x169   : > { %v4205_v23 = vpop.f32.mrb[14].mxu1 }
 0x16a   : > { %v4207_v24 = vpop.f32.mrb[15].mxu1 }
 0x16f   : > { %v4209_v25 = vpop.f32.mrb[16].mxu1 }
 0x170   : > { %v4211_v26 = vpop.f32.mrb[17].mxu1 }
 0x171   : > { %v4213_v27 = vpop.f32.mrb[18].mxu1 }
 0x172   : > { %v4215_v28 = vpop.f32.mrb[19].mxu1 }
 0x178   : > { %v4217_v29 = vpop.f32.mrb[20].mxu1 }
 0x179   : > { %v4219_v30 = vpop.f32.mrb[21].mxu1 }
 0x17a   : > { %v4221_v31 = vpop.f32.mrb[22].mxu1 }
 0x17b   : > { %v4223_v32 = vpop.f32.mrb[23].mxu1 }
 0x182   : > { %v4225_v33 = vpop.f32.mrb[24].mxu1 }
 0x183   : > { %v4227_v34 = vpop.f32.mrb[25].mxu1 }
 0x184   : > { %v4229_v35 = vpop.f32.mrb[26].mxu1 }
 0x185   : > { %v4231_v36 = vpop.f32.mrb[27].mxu1 }
 0x1b3   : > { %v1694_v43 = vpop.f32.mrb[0].mxu0 }
 0x1b4   : > { %v3051_v45 = vadd.f32 %v1694_v43, %v1385_v8  ;;  %v1696_v46 = vpop.f32.mrb[1].mxu0 }
 0x1b5   : > { %v3052_v48 = vadd.f32 %v1696_v46, %v1387_v9  ;;  %v1698_v49 = vpop.f32.mrb[2].mxu0 }
 0x1b6   : > { %v1862_v50 = vadd.f32 %v3051_v45, %v4242_v42  ;;  %v3053_v51 = vadd.f32 %v1698_v49, %v1389_v10  ;;  %v1700_v52 = vpop.f32.mrb[3].mxu0  ;;  %v3414_v49 = vld [vmem:[%s4572_s6 + $0x50] sm:$0xff]  }
 0x1b7   : > { %v1863_v53 = vadd.f32 %v3052_v48, %v4246_v44  ;;  %v3054_v54 = vadd.f32 %v1700_v52, %v1391_v11  ;;  %v3411_v11 = vld [vmem:[%s4572_s6] sm:$0xff]  }
 0x1b8   : > { %v1920_v55 = vmul.f32 %v4248_v47, %v1862_v50  ;;  %v1864_v56 = vadd.f32 %v3053_v51, %v4242_v42  ;;  %vm1890_vm0 = vcmp.gt.f32.partialorder %v1862_v50, 0.0 }
 0x1b9   : > { %v1921_v57 = vmul.f32 %v4248_v47, %v1863_v53  ;;  %v1865_v58 = vadd.f32 %v3054_v54, %v4246_v44  ;;  %vm1891_vm1 = vcmp.gt.f32.partialorder %v1863_v53, 0.0 }
 0x1ba   : > { %vm1892_vm2 = vcmp.gt.f32.partialorder %v1864_v56, 0.0  ;;  %v1922_v59 = vmul.f32 %v4248_v47, %v1864_v56  ;;  %v1948_v62 = vsel %vm1890_vm0, %v1862_v50, %v1920_v55 }
 0x1bb   : > { %vm1893_vm3 = vcmp.gt.f32.partialorder %v1865_v58, 0.0  ;;  %v1923_v60 = vmul.f32 %v4248_v47, %v1865_v58  ;;  %v1704_v61 = vpop.f32.mrb[4].mxu0  ;;  %v1949_v5 = vsel %vm1891_vm1, %v1863_v53, %v1921_v57 }
 0x1bc   : > { %v1950_v63 = vsel %vm1892_vm2, %v1864_v56, %v1922_v59  ;;  %v3055_v0 = vadd.f32 %v1704_v61, %v1395_v12  ;;  %v1706_v1 = vpop.f32.mrb[5].mxu0 }
 0x1bd   : > { %v1976_v2 = vpack.c.bf16 %v1950_v63, %v1948_v62  ;;  %v3056_v3 = vadd.f32 %v1706_v1, %v1397_v13  ;;  %v1708_v4 = vpop.f32.mrb[6].mxu0  ;;  %v1951_v6 = vsel %vm1893_vm3, %v1865_v58, %v1923_v60  ;;  %v3412_v13 = vld [vmem:[%s4572_s6 + $0x48] sm:$0xff]  }
 0x1be   : > { %v1866_v7 = vadd.f32 %v3055_v0, %v4242_v42  ;;  %v3057_v8 = vadd.f32 %v1708_v4, %v4189_v15  ;;  %v1710_v9 = vpop.f32.mrb[7].mxu0  ;;  %v1977_v10 = vpack.c.bf16 %v1951_v6, %v1949_v5  ;;  %v3416_v0 = vld [vmem:[%s4572_s6 + $0x58] sm:$0xff]  }
 0x1bf   : > { %v1867_v14 = vadd.f32 %v3056_v3, %v4246_v44  ;;  %v3058_v12 = vadd.f32 %v1710_v9, %v4191_v16  ;;  %v3413_v16 = vld [vmem:[%s4572_s6 + $0x8] sm:$0xff]   ;;  %v3417_v4 = vld [vmem:[%s4572_s6 + $0x18] sm:$0xff]  }
 0x1c0   : > { %v1924_v37 = vmul.f32 %v4248_v47, %v1866_v7  ;;  %v1868_v40 = vadd.f32 %v3057_v8, %v4242_v42  ;;  %2226 = vmatprep.mubr.bf16.mxu1 %v1977_v10  ;;  %vm1894_vm4 = vcmp.gt.f32.partialorder %v1866_v7, 0.0 }
 0x1c1   : > { %v1925_v15 = vmul.f32 %v4248_v47, %v1867_v14  ;;  %v1869_v43 = vadd.f32 %v3058_v12, %v4246_v44  ;;  %2227 = vmatmul.mubr.bf16.vlgmr.msra.gmra.mrb[28].mxu1 %v1976_v2  ;;  %vm1895_vm5 = vcmp.gt.f32.partialorder %v1867_v14, 0.0 }
 0x1c2   : > { %vm1896_vm6 = vcmp.gt.f32.partialorder %v1868_v40, 0.0  ;;  %v1926_v45 = vmul.f32 %v4248_v47, %v1868_v40  ;;  %2994 = vmatpush3.bf16.msra.mxu1 %v3411_v11  ;;  %v1952_v52 = vsel %vm1894_vm4, %v1866_v7, %v1924_v37  ;;  %v3418_v7 = vld [vmem:[%s4572_s6 + $0x60] sm:$0xff]  }
 0x1c3   : > { %vm1897_vm7 = vcmp.gt.f32.partialorder %v1869_v43, 0.0  ;;  %v1927_v46 = vmul.f32 %v4248_v47, %v1869_v43  ;;  %v1714_v48 = vpop.f32.mrb[8].mxu0  ;;  %2995 = vmatprep.subr.bf16.mxu1 %v3412_v13  ;;  %v1953_v56 = vsel %vm1895_vm5, %v1867_v14, %v1925_v15 }
 0x1c4   : > { %v3059_v50 = vadd.f32 %v1714_v48, %v4193_v17  ;;  %v1716_v51 = vpop.f32.mrb[9].mxu0  ;;  %v1954_v53 = vsel %vm1896_vm6, %v1868_v40, %v1926_v45  ;;  %v3415_v17 = vld [vmem:[%s4572_s6 + $0x10] sm:$0xff]   ;;  %v3420_v48 = vld [vmem:[%s4572_s6 + $0x68] sm:$0xff]  }
 0x1c5   : > { %v3060_v54 = vadd.f32 %v1716_v51, %v4195_v18  ;;  %v1718_v55 = vpop.f32.mrb[10].mxu0  ;;  %v1955_v57 = vsel %vm1897_vm7, %v1869_v43, %v1927_v46  ;;  %v1978_v58 = vpack.c.bf16 %v1954_v53, %v1952_v52  ;;  %v3421_v52 = vld [vmem:[%s4572_s6 + $0x28] sm:$0xff]  }
 0x1c6   : > { %v1870_v59 = vadd.f32 %v3059_v50, %v4242_v42  ;;  %v3061_v60 = vadd.f32 %v1718_v55, %v4197_v19  ;;  %v1720_v61 = vpop.f32.mrb[11].mxu0  ;;  %v1979_v62 = vpack.c.bf16 %v1955_v57, %v1953_v56  ;;  %2996 = vmatpush3.bf16.msra.mxu1 %v3413_v16  ;;  %v3422_v55 = vld [vmem:[%s4572_s6 + $0x70] sm:$0xff]  }
 0x1c7   : > { %v1871_v63 = vadd.f32 %v3060_v54, %v4246_v44  ;;  %v3062_v18 = vadd.f32 %v1720_v61, %v4199_v20  ;;  %2997 = vmatprep.subr.bf16.mxu1 %v3414_v49 }
 0x1c8   : > { %v1928_v1 = vmul.f32 %v4248_v47, %v1870_v59  ;;  %v1872_v19 = vadd.f32 %v3061_v60, %v4242_v42  ;;  %2236 = vmatprep.mubr.bf16.mxu1 %v1979_v62  ;;  %vm1898_vm8 = vcmp.gt.f32.partialorder %v1870_v59, 0.0 }
 0x1c9   : > { %v1929_v2 = vmul.f32 %v4248_v47, %v1871_v63  ;;  %v1873_v3 = vadd.f32 %v3062_v18, %v4246_v44  ;;  %2237 = vmatmul.mubr.bf16.gmra.mrb[32].mxu1 %v1978_v58  ;;  %vm1899_vm9 = vcmp.gt.f32.partialorder %v1871_v63, 0.0 }
 0x1ca   : > { %vm1900_vm10 = vcmp.gt.f32.partialorder %v1872_v19, 0.0  ;;  %v1930_v20 = vmul.f32 %v4248_v47, %v1872_v19  ;;  %2998 = vmatpush3.bf16.msra.mxu1 %v3415_v17  ;;  %v1956_v10 = vsel %vm1898_vm8, %v1870_v59, %v1928_v1 }
 0x1cb   : > { %vm1901_vm11 = vcmp.gt.f32.partialorder %v1873_v3, 0.0  ;;  %v1931_v5 = vmul.f32 %v4248_v47, %v1873_v3  ;;  %v1724_v6 = vpop.f32.mrb[12].mxu0  ;;  %2999 = vmatprep.subr.bf16.mxu1 %v3416_v0  ;;  %v1957_v13 = vsel %vm1899_vm9, %v1871_v63, %v1929_v2 }
 0x1cc   : > { %v3063_v8 = vadd.f32 %v1724_v6, %v4201_v21  ;;  %v1726_v9 = vpop.f32.mrb[13].mxu0  ;;  %v1958_v11 = vsel %vm1900_vm10, %v1872_v19, %v1930_v20  ;;  %v3419_v21 = vld [vmem:[%s4572_s6 + $0x20] sm:$0xff]  }
 0x1cd   : > { %v3064_v14 = vadd.f32 %v1726_v9, %v4203_v22  ;;  %v1728_v12 = vpop.f32.mrb[14].mxu0  ;;  %v1959_v37 = vsel %vm1901_vm11, %v1873_v3, %v1931_v5  ;;  %v1980_v40 = vpack.c.bf16 %v1958_v11, %v1956_v10 }
 0x1ce   : > { %v1874_v15 = vadd.f32 %v3063_v8, %v4242_v42  ;;  %v3065_v43 = vadd.f32 %v1728_v12, %v4205_v23  ;;  %v1730_v45 = vpop.f32.mrb[15].mxu0  ;;  %v1981_v16 = vpack.c.bf16 %v1959_v37, %v1957_v13  ;;  %3000 = vmatpush3.bf16.msra.mxu1 %v3417_v4 }
 0x1cf   : > { %v1875_v46 = vadd.f32 %v3064_v14, %v4246_v44  ;;  %v3066_v22 = vadd.f32 %v1730_v45, %v4207_v24  ;;  %3001 = vmatprep.subr.bf16.mxu1 %v3418_v7 }
 0x1d0   : > { %v1932_v49 = vmul.f32 %v4248_v47, %v1874_v15  ;;  %v1876_v23 = vadd.f32 %v3065_v43, %v4242_v42  ;;  %2246 = vmatprep.mubr.bf16.mxu1 %v1981_v16  ;;  %vm1902_vm12 = vcmp.gt.f32.partialorder %v1874_v15, 0.0 }
 0x1d1   : > { %v1933_v50 = vmul.f32 %v4248_v47, %v1875_v46  ;;  %v1877_v51 = vadd.f32 %v3066_v22, %v4246_v44  ;;  %2247 = vmatmul.mubr.bf16.gmra.mrb[36].mxu1 %v1980_v40  ;;  %vm1903_vm13 = vcmp.gt.f32.partialorder %v1875_v46, 0.0 }
 0x1d2   : > { %vm1904_vm14 = vcmp.gt.f32.partialorder %v1876_v23, 0.0  ;;  %v1934_v24 = vmul.f32 %v4248_v47, %v1876_v23  ;;  %3002 = vmatpush3.bf16.msra.mxu1 %v3419_v21  ;;  %v1960_v58 = vsel %vm1902_vm12, %v1874_v15, %v1932_v49 }
 0x1d3   : > { %vm1905_vm15 = vcmp.gt.f32.partialorder %v1877_v51, 0.0  ;;  %v1935_v53 = vmul.f32 %v4248_v47, %v1877_v51  ;;  %v1734_v54 = vpop.f32.mrb[16].mxu0  ;;  %3003 = vmatprep.subr.bf16.mxu1 %v3420_v48  ;;  %v1961_v62 = vsel %vm1903_vm13, %v1875_v46, %v1933_v50 }
 0x1d4   : > { %v3067_v56 = vadd.f32 %v1734_v54, %v4209_v25  ;;  %v1736_v57 = vpop.f32.mrb[17].mxu0  ;;  %v1962_v59 = vsel %vm1904_vm14, %v1876_v23, %v1934_v24  ;;  %v3423_v25 = vld [vmem:[%s4572_s6 + $0x30] sm:$0xff]  }
 0x1d5   : > { %v3068_v60 = vadd.f32 %v1736_v57, %v4211_v26  ;;  %v1738_v61 = vpop.f32.mrb[18].mxu0  ;;  %v1963_v17 = vsel %vm1905_vm15, %v1877_v51, %v1935_v53  ;;  %v1982_v63 = vpack.c.bf16 %v1962_v59, %v1960_v58 }
 0x1d6   : > { %v1878_v18 = vadd.f32 %v3067_v56, %v4242_v42  ;;  %v3069_v0 = vadd.f32 %v1738_v61, %v4213_v27  ;;  %v1740_v1 = vpop.f32.mrb[19].mxu0  ;;  %v1983_v19 = vpack.c.bf16 %v1963_v17, %v1961_v62  ;;  %3004 = vmatpush3.bf16.msra.mxu1 %v3421_v52 }
 0x1d7   : > { %v1879_v2 = vadd.f32 %v3068_v60, %v4246_v44  ;;  %v3070_v26 = vadd.f32 %v1740_v1, %v4215_v28  ;;  %3005 = vmatprep.subr.bf16.mxu1 %v3422_v55 }
 0x1d8   : > { %v1936_v3 = vmul.f32 %v4248_v47, %v1878_v18  ;;  %v1880_v20 = vadd.f32 %v3069_v0, %v4242_v42  ;;  %2256 = vmatprep.mubr.bf16.mxu1 %v1983_v19  ;;  %vm1906_vm0 = vcmp.gt.f32.partialorder %v1878_v18, 0.0 }
 0x1d9   : > { %v1937_v27 = vmul.f32 %v4248_v47, %v1879_v2  ;;  %v1881_v4 = vadd.f32 %v3070_v26, %v4246_v44  ;;  %2257 = vmatmul.mubr.bf16.gmra.mrb[40].mxu1 %v1982_v63  ;;  %vm1907_vm1 = vcmp.gt.f32.partialorder %v1879_v2, 0.0 }
 0x1da   : > { %vm1908_vm2 = vcmp.gt.f32.partialorder %v1880_v20, 0.0  ;;  %v1938_v5 = vmul.f32 %v4248_v47, %v1880_v20  ;;  %3006 = vmatpush3.bf16.msra.mxu1 %v3423_v25  ;;  %v1964_v9 = vsel %vm1906_vm0, %v1878_v18, %v1936_v3  ;;  %v3425_v25 = vld [vmem:[%s4572_s6 + $0x38] sm:$0xff]  }
 0x1db   : > { %vm1909_vm3 = vcmp.gt.f32.partialorder %v1881_v4, 0.0  ;;  %v1939_v28 = vmul.f32 %v4248_v47, %v1881_v4  ;;  %v1744_v6 = vpop.f32.mrb[20].mxu0  ;;  %v1965_v12 = vsel %vm1907_vm1, %v1879_v2, %v1937_v27 }
 0x1dc   : > { %v3071_v7 = vadd.f32 %v1744_v6, %v4217_v29  ;;  %v1746_v8 = vpop.f32.mrb[21].mxu0  ;;  %v1966_v10 = vsel %vm1908_vm2, %v1880_v20, %v1938_v5  ;;  %v4390_v20 = vstv %s2972_s15 }
 0x1dd   : > { %v3072_v11 = vadd.f32 %v1746_v8, %v4219_v30  ;;  %v1748_v14 = vpop.f32.mrb[22].mxu0  ;;  %v1967_v13 = vsel %vm1909_vm3, %v1881_v4, %v1939_v28  ;;  %v1984_v37 = vpack.c.bf16 %v1966_v10, %v1964_v9 }
 0x1de   : > { %v1882_v40 = vadd.f32 %v3071_v7, %v4242_v42  ;;  %v3073_v15 = vadd.f32 %v1748_v14, %v4221_v31  ;;  %v1750_v43 = vpop.f32.mrb[23].mxu0  ;;  %v1985_v45 = vpack.c.bf16 %v1967_v13, %v1965_v12 }
 0x1df   : > { %v1883_v16 = vadd.f32 %v3072_v11, %v4246_v44  ;;  %v3074_v21 = vadd.f32 %v1750_v43, %v4223_v32 }
 0x1e0   : > { %v1940_v29 = vmul.f32 %v4248_v47, %v1882_v40  ;;  %v1884_v46 = vadd.f32 %v3073_v15, %v4242_v42  ;;  %2266 = vmatprep.mubr.bf16.mxu1 %v1985_v45  ;;  %vm1910_vm4 = vcmp.gt.f32.partialorder %v1882_v40, 0.0 }
 0x1e1   : > { %v1941_v30 = vmul.f32 %v4248_v47, %v1883_v16  ;;  %v1885_v22 = vadd.f32 %v3074_v21, %v4246_v44  ;;  %2267 = vmatmul.mubr.bf16.gmra.mrb[44].mxu1 %v1984_v37  ;;  %vm1911_vm5 = vcmp.gt.f32.partialorder %v1883_v16, 0.0 }
 0x1e2   : > { %vm1912_vm6 = vcmp.gt.f32.partialorder %v1884_v46, 0.0  ;;  %v1942_v31 = vmul.f32 %v4248_v47, %v1884_v46  ;;  %v1968_v50 = vsel %vm1910_vm4, %v1882_v40, %v1940_v29 }
 0x1e3   : > { %vm1913_vm7 = vcmp.gt.f32.partialorder %v1885_v22, 0.0  ;;  %v1943_v48 = vmul.f32 %v4248_v47, %v1885_v22  ;;  %v1754_v49 = vpop.f32.mrb[24].mxu0  ;;  %v1969_v53 = vsel %vm1911_vm5, %v1883_v16, %v1941_v30 }
 0x1e4   : > { %v3075_v32 = vadd.f32 %v1754_v49, %v4225_v33  ;;  %v1756_v23 = vpop.f32.mrb[25].mxu0  ;;  %v1970_v51 = vsel %vm1912_vm6, %v1884_v46, %v1942_v31 }
 0x1e5   : > { %v3076_v24 = vadd.f32 %v1756_v23, %v4227_v34  ;;  %v1758_v52 = vpop.f32.mrb[26].mxu0  ;;  %v1971_v54 = vsel %vm1913_vm7, %v1885_v22, %v1943_v48  ;;  %v1986_v55 = vpack.c.bf16 %v1970_v51, %v1968_v50 }
 0x1e6   : > { %v1886_v56 = vadd.f32 %v3075_v32, %v4242_v42  ;;  %v3077_v57 = vadd.f32 %v1758_v52, %v4229_v35  ;;  %v1760_v58 = vpop.f32.mrb[27].mxu0  ;;  %v1987_v59 = vpack.c.bf16 %v1971_v54, %v1969_v53 }
 0x1e7   : > { %v1887_v60 = vadd.f32 %v3076_v24, %v4246_v44  ;;  %v3078_v61 = vadd.f32 %v1760_v58, %v4231_v36 }
 0x1e8   : > { %v1944_v33 = vmul.f32 %v4248_v47, %v1886_v56  ;;  %v1888_v62 = vadd.f32 %v3077_v57, %v4242_v42  ;;  %2276 = vmatprep.mubr.bf16.mxu1 %v1987_v59  ;;  %vm1914_vm8 = vcmp.gt.f32.partialorder %v1886_v56, 0.0 }
 0x1e9   : > { %v1945_v34 = vmul.f32 %v4248_v47, %v1887_v60  ;;  %v1889_v17 = vadd.f32 %v3078_v61, %v4246_v44  ;;  %2277 = vmatmul.mubr.bf16.gmra.mrb[48].mxu1 %v1986_v55  ;;  %vm1915_vm9 = vcmp.gt.f32.partialorder %v1887_v60, 0.0  ;;  %v3424_v44 = vld [vmem:[%s4572_s6 + $0x78] sm:$0xff]  }
 0x1ea   : > { %vm1916_vm10 = vcmp.gt.f32.partialorder %v1888_v62, 0.0  ;;  %v1946_v35 = vmul.f32 %v4248_v47, %v1888_v62  ;;  %v1972_v18 = vsel %vm1914_vm8, %v1886_v56, %v1944_v33  ;;  %3007 = vmatprep.subr.bf16.mxu1 %v3424_v44 }
 0x1eb   : > { %vm1917_vm11 = vcmp.gt.f32.partialorder %v1889_v17, 0.0  ;;  %v1947_v63 = vmul.f32 %v4248_v47, %v1889_v17  ;;  %v1973_v0 = vsel %vm1915_vm9, %v1887_v60, %v1945_v34  ;;  %3008 = vmatpush3.bf16.msra.mxu1 %v3425_v25  ;;  %v2022_v47 = vld [vmem:[%s4571_s5] sm:$0x3] }
 0x1ec   : > { %v1974_v36 = vsel %vm1916_vm10, %v1888_v62, %v1946_v35  ;;  %v4384_v2 = vrot.slane %v2022_v47, %v1854_v39  ;;  %v4388_v26 = vrot.slane %v2022_v47, %v1858_v41 }
 0x1ed   : > { %v1975_v1 = vsel %vm1917_vm11, %v1889_v17, %v1947_v63  ;;  %v1988_v19 = vpack.c.bf16 %v1974_v36, %v1972_v18 }
 0x1ee   : > { %v1989_v42 = vpack.c.bf16 %v1975_v1, %v1973_v0 }
 0x1f0   : > { %2286 = vmatprep.mubr.bf16.mxu1 %v1989_v42 }
 0x1f1   : > { %2287 = vmatmul.mubr.bf16.gmra.mrb[52].mxu1 %v1988_v19 }
 0x294   : > { %v2228_v3 = vpop.f32.mrb[28].mxu1 }
 0x295   : > { %v2229_v27 = vadd.f32 %v2228_v3, %v4384_v2  ;;  %v2230_v4 = vpop.f32.mrb[29].mxu1 }
 0x296   : > { %v2231_v5 = vadd.f32 %v2230_v4, %v4388_v26  ;;  %v2232_v28 = vpop.f32.mrb[30].mxu1 }
 0x297   : > { %v2327_v6 = vmul.f32 %v4390_v20, %v2229_v27  ;;  %v2233_v7 = vadd.f32 %v2232_v28, %v4384_v2  ;;  %v2234_v8 = vpop.f32.mrb[31].mxu1  ;;  %vm2297_vm12 = vcmp.gt.f32.partialorder %v2229_v27, 0.0 }
 0x298   : > { %v2328_v39 = vmul.f32 %v4390_v20, %v2231_v5  ;;  %v2235_v38 = vadd.f32 %v2234_v8, %v4388_v26  ;;  %vm2298_vm13 = vcmp.gt.f32.partialorder %v2231_v5, 0.0 }
 0x299   : > { %vm2299_vm14 = vcmp.gt.f32.partialorder %v2233_v7, 0.0  ;;  %v2329_v41 = vmul.f32 %v4390_v20, %v2233_v7  ;;  %v2355_v10 = vsel %vm2297_vm12, %v2229_v27, %v2327_v6 }
 0x29a   : > { %vm2300_vm15 = vcmp.gt.f32.partialorder %v2235_v38, 0.0  ;;  %v2330_v9 = vmul.f32 %v4390_v20, %v2235_v38  ;;  %v2356_v13 = vsel %vm2298_vm13, %v2231_v5, %v2328_v39 }
 0x29b   : > { %v2357_v11 = vsel %vm2299_vm14, %v2233_v7, %v2329_v41 }
 0x29c   : > { %v2383_v14 = vpack.c.bf16 %v2357_v11, %v2355_v10  ;;  %v2238_v12 = vpop.f32.mrb[32].mxu1  ;;  %v2358_v37 = vsel %vm2300_vm15, %v2235_v38, %v2330_v9 }
 0x29d   : > { %v2239_v40 = vadd.f32 %v2238_v12, %v4384_v2  ;;  %v2240_v15 = vpop.f32.mrb[33].mxu1  ;;  %v2384_v43 = vpack.c.bf16 %v2358_v37, %v2356_v13 }
 0x29e   : > { %v2241_v45 = vadd.f32 %v2240_v15, %v4388_v26  ;;  %v2242_v16 = vpop.f32.mrb[34].mxu1 }
 0x29f   : > { %v2331_v21 = vmul.f32 %v4390_v20, %v2239_v40  ;;  %v2243_v29 = vadd.f32 %v2242_v16, %v4384_v2  ;;  %v2244_v46 = vpop.f32.mrb[35].mxu1  ;;  %2564 = vmatprep.mubr.bf16.mxu1 %v2384_v43  ;;  %vm2301_vm0 = vcmp.gt.f32.partialorder %v2239_v40, 0.0 }
 0x2a0   : > { %v2332_v30 = vmul.f32 %v4390_v20, %v2241_v45  ;;  %v2245_v22 = vadd.f32 %v2244_v46, %v4388_v26  ;;  %2565 = vmatmul.mubr.bf16.vlgmr.msra.gmra.mrb[56].mxu1 %v2383_v14  ;;  %vm2302_vm1 = vcmp.gt.f32.partialorder %v2241_v45, 0.0 }
 0x2a1   : > { %vm2303_vm2 = vcmp.gt.f32.partialorder %v2243_v29, 0.0  ;;  %v2333_v31 = vmul.f32 %v4390_v20, %v2243_v29  ;;  %v2359_v49 = vsel %vm2301_vm0, %v2239_v40, %v2331_v21 }
 0x2a2   : > { %vm2304_vm3 = vcmp.gt.f32.partialorder %v2245_v22, 0.0  ;;  %v2334_v48 = vmul.f32 %v4390_v20, %v2245_v22  ;;  %v2360_v50 = vsel %vm2302_vm1, %v2241_v45, %v2332_v30 }
 0x2a3   : > { %v2361_v32 = vsel %vm2303_vm2, %v2243_v29, %v2333_v31 }
 0x2a4   : > { %v2248_v23 = vpop.f32.mrb[36].mxu1  ;;  %v2362_v51 = vsel %vm2304_vm3, %v2245_v22, %v2334_v48  ;;  %v2385_v24 = vpack.c.bf16 %v2361_v32, %v2359_v49 }
 0x2a5   : > { %v2249_v52 = vadd.f32 %v2248_v23, %v4384_v2  ;;  %v2250_v53 = vpop.f32.mrb[37].mxu1  ;;  %v2386_v54 = vpack.c.bf16 %v2362_v51, %v2360_v50 }
 0x2a6   : > { %v2251_v55 = vadd.f32 %v2250_v53, %v4388_v26  ;;  %v2252_v56 = vpop.f32.mrb[38].mxu1 }
 0x2a7   : > { %v2335_v57 = vmul.f32 %v4390_v20, %v2249_v52  ;;  %v2253_v58 = vadd.f32 %v2252_v56, %v4384_v2  ;;  %v2254_v59 = vpop.f32.mrb[39].mxu1  ;;  %2572 = vmatprep.mubr.bf16.mxu1 %v2386_v54  ;;  %vm2305_vm4 = vcmp.gt.f32.partialorder %v2249_v52, 0.0 }
 0x2a8   : > { %v2336_v60 = vmul.f32 %v4390_v20, %v2251_v55  ;;  %v2255_v61 = vadd.f32 %v2254_v59, %v4388_v26  ;;  %2573 = vmatmul.mubr.bf16.gmra.mrb[60].mxu1 %v2385_v24  ;;  %vm2306_vm5 = vcmp.gt.f32.partialorder %v2251_v55, 0.0 }
 0x2a9   : > { %vm2307_vm6 = vcmp.gt.f32.partialorder %v2253_v58, 0.0  ;;  %v2337_v33 = vmul.f32 %v4390_v20, %v2253_v58  ;;  %v2363_v34 = vsel %vm2305_vm4, %v2249_v52, %v2335_v57 }
 0x2aa   : > { %vm2308_vm7 = vcmp.gt.f32.partialorder %v2255_v61, 0.0  ;;  %v2338_v62 = vmul.f32 %v4390_v20, %v2255_v61  ;;  %v2364_v63 = vsel %vm2306_vm5, %v2251_v55, %v2336_v60 }
 0x2ab   : > { %v2365_v17 = vsel %vm2307_vm6, %v2253_v58, %v2337_v33 }
 0x2ac   : > { %v2258_v35 = vpop.f32.mrb[40].mxu1  ;;  %v2366_v18 = vsel %vm2308_vm7, %v2255_v61, %v2338_v62  ;;  %v2387_v36 = vpack.c.bf16 %v2365_v17, %v2363_v34 }
 0x2ad   : > { %v2259_v0 = vadd.f32 %v2258_v35, %v4384_v2  ;;  %v2260_v1 = vpop.f32.mrb[41].mxu1  ;;  %v2388_v19 = vpack.c.bf16 %v2366_v18, %v2364_v63 }
 0x2ae   : > { %v2261_v42 = vadd.f32 %v2260_v1, %v4388_v26  ;;  %v2262_v44 = vpop.f32.mrb[42].mxu1 }
 0x2af   : > { %v2339_v25 = vmul.f32 %v4390_v20, %v2259_v0  ;;  %v2263_v47 = vadd.f32 %v2262_v44, %v4384_v2  ;;  %v2264_v3 = vpop.f32.mrb[43].mxu1  ;;  %2580 = vmatprep.mubr.bf16.mxu1 %v2388_v19  ;;  %vm2309_vm8 = vcmp.gt.f32.partialorder %v2259_v0, 0.0 }
 0x2b0   : > { %v2340_v27 = vmul.f32 %v4390_v20, %v2261_v42  ;;  %v2265_v4 = vadd.f32 %v2264_v3, %v4388_v26  ;;  %2581 = vmatmul.mubr.bf16.gmra.mrb[64].mxu1 %v2387_v36  ;;  %vm2310_vm9 = vcmp.gt.f32.partialorder %v2261_v42, 0.0 }
 0x2b1   : > { %vm2311_vm10 = vcmp.gt.f32.partialorder %v2263_v47, 0.0  ;;  %v2341_v5 = vmul.f32 %v4390_v20, %v2263_v47  ;;  %v2367_v6 = vsel %vm2309_vm8, %v2259_v0, %v2339_v25 }
 0x2b2   : > { %vm2312_vm11 = vcmp.gt.f32.partialorder %v2265_v4, 0.0  ;;  %v2342_v28 = vmul.f32 %v4390_v20, %v2265_v4  ;;  %v2368_v39 = vsel %vm2310_vm9, %v2261_v42, %v2340_v27 }
 0x2b3   : > { %v2369_v7 = vsel %vm2311_vm10, %v2263_v47, %v2341_v5 }
 0x2b4   : > { %v2268_v8 = vpop.f32.mrb[44].mxu1  ;;  %v2370_v38 = vsel %vm2312_vm11, %v2265_v4, %v2342_v28  ;;  %v2389_v41 = vpack.c.bf16 %v2369_v7, %v2367_v6 }
 0x2b5   : > { %v2269_v9 = vadd.f32 %v2268_v8, %v4384_v2  ;;  %v2270_v10 = vpop.f32.mrb[45].mxu1  ;;  %v2390_v11 = vpack.c.bf16 %v2370_v38, %v2368_v39 }
 0x2b6   : > { %v2271_v14 = vadd.f32 %v2270_v10, %v4388_v26  ;;  %v2272_v12 = vpop.f32.mrb[46].mxu1 }
 0x2b7   : > { %v2343_v13 = vmul.f32 %v4390_v20, %v2269_v9  ;;  %v2273_v37 = vadd.f32 %v2272_v12, %v4384_v2  ;;  %v2274_v40 = vpop.f32.mrb[47].mxu1  ;;  %2588 = vmatprep.mubr.bf16.mxu1 %v2390_v11  ;;  %vm2313_vm12 = vcmp.gt.f32.partialorder %v2269_v9, 0.0 }
 0x2b8   : > { %v2344_v15 = vmul.f32 %v4390_v20, %v2271_v14  ;;  %v2275_v43 = vadd.f32 %v2274_v40, %v4388_v26  ;;  %2589 = vmatmul.mubr.bf16.gmra.mrb[68].mxu1 %v2389_v41  ;;  %vm2314_vm13 = vcmp.gt.f32.partialorder %v2271_v14, 0.0 }
 0x2b9   : > { %vm2315_vm14 = vcmp.gt.f32.partialorder %v2273_v37, 0.0  ;;  %v2345_v45 = vmul.f32 %v4390_v20, %v2273_v37  ;;  %v2371_v21 = vsel %vm2313_vm12, %v2269_v9, %v2343_v13 }
 0x2ba   : > { %vm2316_vm15 = vcmp.gt.f32.partialorder %v2275_v43, 0.0  ;;  %v2346_v16 = vmul.f32 %v4390_v20, %v2275_v43  ;;  %v2372_v30 = vsel %vm2314_vm13, %v2271_v14, %v2344_v15 }
 0x2bb   : > { %v2373_v29 = vsel %vm2315_vm14, %v2273_v37, %v2345_v45 }
 0x2bc   : > { %v2278_v46 = vpop.f32.mrb[48].mxu1  ;;  %v2374_v22 = vsel %vm2316_vm15, %v2275_v43, %v2346_v16  ;;  %v2391_v31 = vpack.c.bf16 %v2373_v29, %v2371_v21 }
 0x2bd   : > { %v2279_v48 = vadd.f32 %v2278_v46, %v4384_v2  ;;  %v2280_v49 = vpop.f32.mrb[49].mxu1  ;;  %v2392_v32 = vpack.c.bf16 %v2374_v22, %v2372_v30 }
 0x2be   : > { %v2281_v23 = vadd.f32 %v2280_v49, %v4388_v26  ;;  %v2282_v50 = vpop.f32.mrb[50].mxu1 }
 0x2bf   : > { %v2347_v51 = vmul.f32 %v4390_v20, %v2279_v48  ;;  %v2283_v24 = vadd.f32 %v2282_v50, %v4384_v2  ;;  %v2284_v52 = vpop.f32.mrb[51].mxu1  ;;  %2596 = vmatprep.mubr.bf16.mxu1 %v2392_v32  ;;  %vm2317_vm0 = vcmp.gt.f32.partialorder %v2279_v48, 0.0 }
 0x2c0   : > { %v2348_v53 = vmul.f32 %v4390_v20, %v2281_v23  ;;  %v2285_v54 = vadd.f32 %v2284_v52, %v4388_v26  ;;  %2597 = vmatmul.mubr.bf16.gmra.mrb[72].mxu1 %v2391_v31  ;;  %vm2318_vm1 = vcmp.gt.f32.partialorder %v2281_v23, 0.0 }
 0x2c1   : > { %vm2319_vm2 = vcmp.gt.f32.partialorder %v2283_v24, 0.0  ;;  %v2349_v55 = vmul.f32 %v4390_v20, %v2283_v24  ;;  %v2375_v57 = vsel %vm2317_vm0, %v2279_v48, %v2347_v51 }
 0x2c2   : > { %vm2320_vm3 = vcmp.gt.f32.partialorder %v2285_v54, 0.0  ;;  %v2350_v56 = vmul.f32 %v4390_v20, %v2285_v54  ;;  %v2376_v60 = vsel %vm2318_vm1, %v2281_v23, %v2348_v53 }
 0x2c3   : > { %v2377_v58 = vsel %vm2319_vm2, %v2283_v24, %v2349_v55 }
 0x2c4   : > { %v2288_v59 = vpop.f32.mrb[52].mxu1  ;;  %v2378_v61 = vsel %vm2320_vm3, %v2285_v54, %v2350_v56  ;;  %v2393_v33 = vpack.c.bf16 %v2377_v58, %v2375_v57 }
 0x2c5   : > { %v2289_v62 = vadd.f32 %v2288_v59, %v4384_v2  ;;  %v2290_v34 = vpop.f32.mrb[53].mxu1  ;;  %v2394_v17 = vpack.c.bf16 %v2378_v61, %v2376_v60 }
 0x2c6   : > { %v2291_v35 = vadd.f32 %v2290_v34, %v4388_v26  ;;  %v2292_v63 = vpop.f32.mrb[54].mxu1 }
 0x2c7   : > { %v2351_v18 = vmul.f32 %v4390_v20, %v2289_v62  ;;  %v2293_v36 = vadd.f32 %v2292_v63, %v4384_v2  ;;  %v2294_v0 = vpop.f32.mrb[55].mxu1  ;;  %2604 = vmatprep.mubr.bf16.mxu1 %v2394_v17  ;;  %vm2321_vm4 = vcmp.gt.f32.partialorder %v2289_v62, 0.0 }
 0x2c8   : > { %v2352_v1 = vmul.f32 %v4390_v20, %v2291_v35  ;;  %v2295_v19 = vadd.f32 %v2294_v0, %v4388_v26  ;;  %2605 = vmatmul.mubr.bf16.gmra.mrb[76].mxu1 %v2393_v33  ;;  %vm2322_vm5 = vcmp.gt.f32.partialorder %v2291_v35, 0.0  ;;  %v4451_v26 = vld [vmem:[%s4573_s7] ss:$0 sm:$0xff] }
 0x2c9   : > { %vm2323_vm6 = vcmp.gt.f32.partialorder %v2293_v36, 0.0  ;;  %v2353_v42 = vmul.f32 %v4390_v20, %v2293_v36  ;;  %v2379_v25 = vsel %vm2321_vm4, %v2289_v62, %v2351_v18 }
 0x2ca   : > { %vm2324_vm7 = vcmp.gt.f32.partialorder %v2295_v19, 0.0  ;;  %v2354_v44 = vmul.f32 %v4390_v20, %v2295_v19  ;;  %v2380_v3 = vsel %vm2322_vm5, %v2291_v35, %v2352_v1 }
 0x2cb   : > { %v2381_v47 = vsel %vm2323_vm6, %v2293_v36, %v2353_v42 }
 0x2cc   : > { %v2382_v27 = vsel %vm2324_vm7, %v2295_v19, %v2354_v44  ;;  %v2395_v2 = vpack.c.bf16 %v2381_v47, %v2379_v25 }
 0x2cd   : > { %v2396_v4 = vpack.c.bf16 %v2382_v27, %v2380_v3 }
 0x2cf   : > { %2612 = vmatprep.mubr.bf16.mxu1 %v2396_v4 }
 0x2d0   : > { %2613 = vmatmul.mubr.bf16.gmra.mrb[80].mxu1 %v2395_v2 }
 0x373   : > { %v3009_v5 = vpop.f32.mrb[56].mxu1 }
 0x374   : > { %v3010_v28 = vpop.f32.mrb[57].mxu1 }
 0x375   : > { %v3011_v6 = vadd.f32 %v3010_v28, %v3009_v5  ;;  %v3012_v7 = vpop.f32.mrb[58].mxu1 }
 0x376   : > { %v3013_v8 = vpop.f32.mrb[59].mxu1 }
 0x377   : > { %v3014_v39 = vadd.f32 %v3013_v8, %v3012_v7  ;;  %v4454_v20 = vadd.f32 %v3011_v6, %v4451_v26 }
 0x379   : > { %v4457_v38 = vadd.f32 %v3014_v39, %v4451_v26  ;;  %v2621_v41 = vmul.f32 %v4454_v20, %v4454_v20 }
 0x37b   : > { %v3015_v9 = vpop.f32.mrb[60].mxu1  ;;  %2635 = vadd.xlane.f32.xlu0 %v2621_v41  ;;  %v2622_v12 = vmul.f32 %v4457_v38, %v4457_v38 }
 0x37c   : > { %v3016_v10 = vpop.f32.mrb[61].mxu1 }
 0x37d   : > { %v3017_v11 = vadd.f32 %v3016_v10, %v3015_v9  ;;  %v3018_v14 = vpop.f32.mrb[62].mxu1 }
 0x37e   : > { %v3019_v13 = vpop.f32.mrb[63].mxu1 }
 0x37f   : > { %v3020_v37 = vadd.f32 %v3019_v13, %v3018_v14  ;;  %2637 = vadd.xlane.f32.xlu0 %v2622_v12  ;;  %v4464_v40 = vadd.f32 %v3017_v11, %v4451_v26 }
 0x381   : > { %v4467_v15 = vadd.f32 %v3020_v37, %v4451_v26  ;;  %v2623_v43 = vmul.f32 %v4464_v40, %v4464_v40 }
 0x383   : > { %v3021_v45 = vpop.f32.mrb[64].mxu1  ;;  %2639 = vadd.xlane.f32.xlu1 %v2623_v43  ;;  %v2624_v46 = vmul.f32 %v4467_v15, %v4467_v15 }
 0x384   : > { %v3022_v16 = vpop.f32.mrb[65].mxu1 }
 0x385   : > { %v3023_v21 = vadd.f32 %v3022_v16, %v3021_v45  ;;  %v3024_v29 = vpop.f32.mrb[66].mxu1 }
 0x386   : > { %v3025_v30 = vpop.f32.mrb[67].mxu1 }
 0x387   : > { %v4474_v22 = vadd.f32 %v3023_v21, %v4451_v26  ;;  %v3026_v31 = vadd.f32 %v3025_v30, %v3024_v29  ;;  %2641 = vadd.xlane.f32.xlu1 %v2624_v46 }
 0x389   : > { %v4477_v48 = vadd.f32 %v3026_v31, %v4451_v26  ;;  %v2625_v49 = vmul.f32 %v4474_v22, %v4474_v22 }
 0x38b   : > { %v3027_v32 = vpop.f32.mrb[68].mxu1  ;;  %2643 = vadd.xlane.f32.xlu0 %v2625_v49  ;;  %v2626_v23 = vmul.f32 %v4477_v48, %v4477_v48 }
 0x38c   : > { %v3028_v50 = vpop.f32.mrb[69].mxu1 }
 0x38d   : > { %v3029_v51 = vadd.f32 %v3028_v50, %v3027_v32  ;;  %v3030_v24 = vpop.f32.mrb[70].mxu1  ;;  %2645 = vadd.xlane.f32.xlu1 %v2626_v23 }
 0x38e   : > { %v3031_v52 = vpop.f32.mrb[71].mxu1 }
 0x38f   : > { %v4484_v53 = vadd.f32 %v3029_v51, %v4451_v26  ;;  %v3032_v54 = vadd.f32 %v3031_v52, %v3030_v24 }
 0x391   : > { %v4487_v55 = vadd.f32 %v3032_v54, %v4451_v26  ;;  %v2627_v56 = vmul.f32 %v4484_v53, %v4484_v53 }
 0x393   : > { %v3033_v57 = vpop.f32.mrb[72].mxu1  ;;  %2647 = vadd.xlane.f32.xlu0 %v2627_v56  ;;  %v2628_v58 = vmul.f32 %v4487_v55, %v4487_v55 }
 0x394   : > { %v3034_v59 = vpop.f32.mrb[73].mxu1 }
 0x395   : > { %v3035_v60 = vadd.f32 %v3034_v59, %v3033_v57  ;;  %v3036_v61 = vpop.f32.mrb[74].mxu1  ;;  %2649 = vadd.xlane.f32.xlu1 %v2628_v58 }
 0x396   : > { %v3037_v33 = vpop.f32.mrb[75].mxu1 }
 0x397   : > { %v4494_v62 = vadd.f32 %v3035_v60, %v4451_v26  ;;  %v3038_v34 = vadd.f32 %v3037_v33, %v3036_v61 }
 0x399   : > { %v4497_v17 = vadd.f32 %v3038_v34, %v4451_v26  ;;  %v2629_v35 = vmul.f32 %v4494_v62, %v4494_v62 }
 0x39b   : > { %v3039_v63 = vpop.f32.mrb[76].mxu1  ;;  %2651 = vadd.xlane.f32.xlu0 %v2629_v35  ;;  %v2630_v18 = vmul.f32 %v4497_v17, %v4497_v17 }
 0x39c   : > { %v3040_v36 = vpop.f32.mrb[77].mxu1 }
 0x39d   : > { %v3041_v0 = vadd.f32 %v3040_v36, %v3039_v63  ;;  %v3042_v1 = vpop.f32.mrb[78].mxu1  ;;  %2653 = vadd.xlane.f32.xlu1 %v2630_v18 }
 0x39e   : > { %v3043_v19 = vpop.f32.mrb[79].mxu1 }
 0x39f   : > { %v4504_v42 = vadd.f32 %v3041_v0, %v4451_v26  ;;  %v3044_v44 = vadd.f32 %v3043_v19, %v3042_v1 }
 0x3a1   : > { %v4507_v25 = vadd.f32 %v3044_v44, %v4451_v26  ;;  %v2631_v47 = vmul.f32 %v4504_v42, %v4504_v42 }
 0x3a3   : > { %2655 = vadd.xlane.f32.xlu0 %v2631_v47  ;;  %v3045_v3 = vpop.f32.mrb[80].mxu1  ;;  %v2632_v27 = vmul.f32 %v4507_v25, %v4507_v25 }
 0x3a4   : > { %v3046_v2 = vpop.f32.mrb[81].mxu1 }
 0x3a5   : > { %v3047_v4 = vadd.f32 %v3046_v2, %v3045_v3  ;;  %2657 = vadd.xlane.f32.xlu1 %v2632_v27  ;;  %v3048_v5 = vpop.f32.mrb[82].mxu1 }
 0x3a6   : > { %v3049_v28 = vpop.f32.mrb[83].mxu1 }
 0x3a7   : > { %v4514_v6 = vadd.f32 %v3047_v4, %v4451_v26  ;;  %v3050_v7 = vadd.f32 %v3049_v28, %v3048_v5 }
 0x3a9   : > { %v4517_v8 = vadd.f32 %v3050_v7, %v4451_v26  ;;  %v2633_v39 = vmul.f32 %v4514_v6, %v4514_v6 }
 0x3ab   : > { %2659 = vadd.xlane.f32.xlu0 %v2633_v39  ;;  %v2634_v41 = vmul.f32 %v4517_v8, %v4517_v8 }
 0x3ad   : > { %2661 = vadd.xlane.f32.xlu1 %v2634_v41 }
 0x408   : > { %v2636_v9 = vpop.xlane.xlu0 %2635 }
 0x409   : > { %v2663_v10 = vmax.f32 %v2636_v9, 1e-24 }
 0x40b   : > { %3426 = vrsqrt.f32 %v2663_v10 }
 0x40c   : > { %v2638_v11 = vpop.xlane.xlu0 %2637 }
 0x40d   : > { %v2664_v14 = vmax.f32 %v2638_v11, 1e-24 }
 0x40f   : > { %3428 = vrsqrt.f32 %v2664_v14 }
 0x410   : > { %v2640_v12 = vpop.xlane.xlu1 %2639 }
 0x411   : > { %v2665_v13 = vmax.f32 %v2640_v12, 1e-24 }
 0x413   : > { %3430 = vrsqrt.f32 %v2665_v13 }
 0x414   : > { %v2642_v26 = vpop.xlane.xlu1 %2641 }
 0x415   : > { %v3427_v37 = vpop.eup %3426  ;;  %v2666_v43 = vmax.f32 %v2642_v26, 1e-24 }
 0x416   : > { %v2691_v45 = vmul.f32 %v3427_v37, %v4454_v20 }
 0x417   : > { %3432 = vrsqrt.f32 %v2666_v43 }
 0x418   : > { %2705 = vst [vmem:[%s4527_s22] sm:$0xff] %v2691_v45  ;;  %v2644_v16 = vpop.xlane.xlu0 %2643 }
 0x419   : > { %v3429_v21 = vpop.eup %3428  ;;  %v2667_v29 = vmax.f32 %v2644_v16, 1e-24 }
 0x41a   : > { %v2692_v46 = vmul.f32 %v3429_v21, %v4457_v38  ;;  %v2646_v30 = vpop.xlane.xlu1 %2645 }
 0x41b   : > { %3434 = vrsqrt.f32 %v2667_v29  ;;  %v2668_v31 = vmax.f32 %v2646_v30, 1e-24 }
 0x41c   : > { %2706 = vst [vmem:[%s4527_s22 + $0x8] sm:$0xff] %v2692_v46 }
 0x41d   : > { %v3431_v49 = vpop.eup %3430  ;;  %3436 = vrsqrt.f32 %v2668_v31 }
 0x41e   : > { %v2693_v32 = vmul.f32 %v3431_v49, %v4464_v40 }
 0x420   : > { %2707 = vst [vmem:[%s4527_s22 + $0x10] sm:$0xff] %v2693_v32  ;;  %v2648_v23 = vpop.xlane.xlu0 %2647 }
 0x421   : > { %v3433_v20 = vpop.eup %3432  ;;  %v2669_v50 = vmax.f32 %v2648_v23, 1e-24 }
 0x422   : > { %v2694_v51 = vmul.f32 %v3433_v20, %v4467_v15  ;;  %v2650_v24 = vpop.xlane.xlu1 %2649 }
 0x423   : > { %3438 = vrsqrt.f32 %v2669_v50  ;;  %v2670_v38 = vmax.f32 %v2650_v24, 1e-24 }
 0x424   : > { %2708 = vst [vmem:[%s4527_s22 + $0x18] sm:$0xff] %v2694_v51 }
 0x425   : > { %v3435_v52 = vpop.eup %3434  ;;  %3440 = vrsqrt.f32 %v2670_v38 }
 0x426   : > { %v2695_v54 = vmul.f32 %v3435_v52, %v4474_v22 }
 0x427   : > { %v3437_v56 = vpop.eup %3436 }
 0x428   : > { %2709 = vst [vmem:[%s4527_s22 + $0x20] sm:$0xff] %v2695_v54  ;;  %v2696_v40 = vmul.f32 %v3437_v56, %v4477_v48  ;;  %v2652_v57 = vpop.xlane.xlu0 %2651 }
 0x429   : > { %v2671_v58 = vmax.f32 %v2652_v57, 1e-24 }
 0x42a   : > { %2710 = vst [vmem:[%s4527_s22 + $0x28] sm:$0xff] %v2696_v40  ;;  %v2654_v59 = vpop.xlane.xlu1 %2653 }
 0x42b   : > { %3442 = vrsqrt.f32 %v2671_v58  ;;  %v2672_v15 = vmax.f32 %v2654_v59, 1e-24 }
 0x42d   : > { %v3439_v60 = vpop.eup %3438  ;;  %3444 = vrsqrt.f32 %v2672_v15 }
 0x42e   : > { %v2697_v61 = vmul.f32 %v3439_v60, %v4484_v53 }
 0x42f   : > { %v3441_v33 = vpop.eup %3440 }
 0x430   : > { %2711 = vst [vmem:[%s4527_s22 + $0x30] sm:$0xff] %v2697_v61  ;;  %v2698_v22 = vmul.f32 %v3441_v33, %v4487_v55  ;;  %v2656_v34 = vpop.xlane.xlu0 %2655 }
 0x431   : > { %v2673_v35 = vmax.f32 %v2656_v34, 1e-24 }
 0x432   : > { %2712 = vst [vmem:[%s4527_s22 + $0x38] sm:$0xff] %v2698_v22  ;;  %v2658_v48 = vpop.xlane.xlu1 %2657 }
 0x433   : > { %3446 = vrsqrt.f32 %v2673_v35  ;;  %v2674_v63 = vmax.f32 %v2658_v48, 1e-24 }
 0x435   : > { %v3443_v18 = vpop.eup %3442  ;;  %3448 = vrsqrt.f32 %v2674_v63 }
 0x436   : > { %v2699_v36 = vmul.f32 %v3443_v18, %v4494_v62 }
 0x437   : > { %v3445_v0 = vpop.eup %3444 }
 0x438   : > { %2713 = vst [vmem:[%s4527_s22 + $0x40] sm:$0xff] %v2699_v36  ;;  %v2700_v53 = vmul.f32 %v3445_v0, %v4497_v17  ;;  %v2660_v1 = vpop.xlane.xlu0 %2659 }
 0x439   : > { %v2675_v19 = vmax.f32 %v2660_v1, 1e-24 }
 0x43a   : > { %2714 = vst [vmem:[%s4527_s22 + $0x48] sm:$0xff] %v2700_v53  ;;  %v2662_v55 = vpop.xlane.xlu1 %2661 }
 0x43b   : > { %3450 = vrsqrt.f32 %v2675_v19  ;;  %v2676_v44 = vmax.f32 %v2662_v55, 1e-24 }
 0x43d   : > { %v3447_v47 = vpop.eup %3446  ;;  %3452 = vrsqrt.f32 %v2676_v44 }
 0x43e   : > { %v2701_v3 = vmul.f32 %v3447_v47, %v4504_v42 }
 0x43f   : > { %v3449_v27 = vpop.eup %3448 }
 0x440   : > { %2715 = vst [vmem:[%s4527_s22 + $0x50] sm:$0xff] %v2701_v3  ;;  %v2702_v62 = vmul.f32 %v3449_v27, %v4507_v25 }
 0x442   : > { %2716 = vst [vmem:[%s4527_s22 + $0x58] sm:$0xff] %v2702_v62 }
 0x445   : > { %v3451_v2 = vpop.eup %3450 }
 0x446   : > { %v2703_v17 = vmul.f32 %v3451_v2, %v4514_v6 }
 0x447   : > { %v3453_v4 = vpop.eup %3452 }
 0x448   : > { %2717 = vst [vmem:[%s4527_s22 + $0x60] sm:$0xff] %v2703_v17  ;;  %v2704_v5 = vmul.f32 %v3453_v4, %v4517_v8 }
 0x44a   : > { %2718 = vst [vmem:[%s4527_s22 + $0x68] sm:$0xff] %v2704_v5 }
 0x44b PF: > { %s19_s29 = sadd.s32 1, %s3495_s29   ;;  %s4577_s27 = smov %s3491_s28 }
 0x44c   : > { %p16_p2 = scmp.ge.s32.totalorder %s19_s29, 4   ;;  %s4578_s28 = smov %s4580_s9 }
 0x44e   :  { %18 = sbr.rel (!%p16_p2) target bundleno = 2 (0x2), region = 95 }
 0x455   :  { %2741 = vsyncpa [#allocation4], 1 }
 0x456   :  { %2743 = vsyncpa [#allocation4 + $0x1], 1 }

</bundles_post_ra>
